<compile_context>
chip_gen: v7x
topology: tpu7x:2x2x1
jax: 0.10.0
libtpu: 0.0.40
codegen_flags: <defaults>
</compile_context>

<pallas_src>
import functools

import jax
import jax.numpy as jnp
from jax.experimental import pallas as pl
from jax.experimental.pallas import tpu as pltpu


# ---------------------------------------------------------------------------
# Pallas kernel
# ---------------------------------------------------------------------------

def _kv_cache_update_kernel(
    pos_ref,                          # SMEM (T,) int32  (scalar prefetch)
    k_new_ref, v_new_ref,             # HBM  (B, H, T, D)
    k_cache_in_ref, v_cache_in_ref,   # HBM  (B, H, S, D)  aliased to outputs
    k_out_ref, v_out_ref,             # HBM  (B, H, S, D)
    k_buf, v_buf,                     # VMEM (C, B, H, 1, D) staging buffers
    sems,                             # DMA semaphores (2, C)
    *, tokens_per_block, num_tokens):
    del k_cache_in_ref, v_cache_in_ref  # same buffers as k_out_ref / v_out_ref
    C = tokens_per_block
    base = pl.program_id(0) * C

    def in_copies(i, t):
        # HBM new-KV row t -> VMEM staging slot i
        return (
            pltpu.make_async_copy(k_new_ref.at[:, :, pl.ds(t, 1), :],
                                  k_buf.at[i], sems.at[0, i]),
            pltpu.make_async_copy(v_new_ref.at[:, :, pl.ds(t, 1), :],
                                  v_buf.at[i], sems.at[1, i]),
        )

    def out_copies(i, p):
        # VMEM staging slot i -> HBM cache row input_pos[t]
        return (
            pltpu.make_async_copy(k_buf.at[i],
                                  k_out_ref.at[:, :, pl.ds(p, 1), :],
                                  sems.at[0, i]),
            pltpu.make_async_copy(v_buf.at[i],
                                  v_out_ref.at[:, :, pl.ds(p, 1), :],
                                  sems.at[1, i]),
        )

    # Phase 1: gather this chunk's new rows HBM -> VMEM (2*C DMAs in flight).
    for i in range(C):
        @pl.when(base + i < num_tokens)
        def _(i=i):
            for cp in in_copies(i, base + i):
                cp.start()
    for i in range(C):
        @pl.when(base + i < num_tokens)
        def _(i=i):
            for cp in in_copies(i, base + i):
                cp.wait()

    # Phase 2: scatter VMEM -> HBM cache rows at input_pos (2*C DMAs in flight).
    for i in range(C):
        @pl.when(base + i < num_tokens)
        def _(i=i):
            for cp in out_copies(i, pos_ref[base + i]):
                cp.start()
    for i in range(C):
        @pl.when(base + i < num_tokens)
        def _(i=i):
            for cp in out_copies(i, pos_ref[base + i]):
                cp.wait()


# ---------------------------------------------------------------------------
# Wrapper (mirrors KVCache.forward)
# ---------------------------------------------------------------------------

def kv_cache_init(k_shape, v_shape, dtype=jnp.float32):
    """Mirrors KVCache.__init__ / reset_parameters (zero-filled buffers)."""
    return jnp.zeros(k_shape, dtype), jnp.zeros(v_shape, dtype)


def kv_cache_update(k_cache, v_cache, input_pos, k_new, v_new, *,
                    tokens_per_block=8):
    """index_copy_ along dim 2 of both caches; returns the full updated (k, v)."""
    B, H, S, D = k_cache.shape
    T = k_new.shape[2]
    assert v_cache.shape == (B, H, S, D)
    assert k_new.shape == (B, H, T, D) and v_new.shape == (B, H, T, D)
    assert input_pos.shape == (T,)

    # `self.k = self.k.to(k.dtype)` in the PyTorch module.
    k_cache = k_cache.astype(k_new.dtype)
    v_cache = v_cache.astype(v_new.dtype)
    input_pos = input_pos.astype(jnp.int32)

    C = max(1, min(tokens_per_block, T))
    grid = (pl.cdiv(T, C),)

    kernel = functools.partial(_kv_cache_update_kernel,
                               tokens_per_block=C, num_tokens=T)

    row_bytes = B * H * D * jnp.dtype(k_new.dtype).itemsize
    cost = pl.CostEstimate(flops=0, transcendentals=0,
                           bytes_accessed=4 * T * row_bytes)

    grid_spec = pltpu.PrefetchScalarGridSpec(
        num_scalar_prefetch=1,                    # input_pos -> SMEM
        grid=grid,
        in_specs=[
            pl.BlockSpec(memory_space=pl.ANY),    # k_new   (stays in HBM)
            pl.BlockSpec(memory_space=pl.ANY),    # v_new
            pl.BlockSpec(memory_space=pl.ANY),    # k_cache (aliased -> out 0)
            pl.BlockSpec(memory_space=pl.ANY),    # v_cache (aliased -> out 1)
        ],
        out_specs=[
            pl.BlockSpec(memory_space=pl.ANY),
            pl.BlockSpec(memory_space=pl.ANY),
        ],
        scratch_shapes=[
            pltpu.VMEM((C, B, H, 1, D), k_new.dtype),
            pltpu.VMEM((C, B, H, 1, D), v_new.dtype),
            pltpu.SemaphoreType.DMA((2, C)),
        ],
    )

    k_out, v_out = pl.pallas_call(
        kernel,
        grid_spec=grid_spec,
        out_shape=[jax.ShapeDtypeStruct((B, H, S, D), k_new.dtype),
                   jax.ShapeDtypeStruct((B, H, S, D), v_new.dtype)],
        # call args: (input_pos, k_new, v_new, k_cache, v_cache)
        # -> indices include the scalar-prefetch operand.
        input_output_aliases={3: 0, 4: 1},
        compiler_params=pltpu.CompilerParams(
            dimension_semantics=("arbitrary",)),
        cost_estimate=cost,
    )(input_pos, k_new, v_new, k_cache, v_cache)
    return k_out, v_out


# ---------------------------------------------------------------------------
# Main
# ---------------------------------------------------------------------------

if __name__ == "__main__":
    # Cache shape (batch=2, heads=4, max_seq=16, head_size=128); update 8 tokens.
    B, H, S, D = 2, 4, 16, 128
    T = 8

    key = jax.random.PRNGKey(0)
    k1, k2, k3, k4 = jax.random.split(key, 4)

    # Non-trivial pre-existing cache so both the scattered rows AND the untouched
    # rows (which must survive unchanged) are verified.
    k_cache = jax.random.normal(k1, (B, H, S, D), dtype=jnp.float32)
    v_cache = jax.random.normal(k2, (B, H, S, D), dtype=jnp.float32)
    k_new = jax.random.normal(k3, (B, H, T, D), dtype=jnp.float32)
    v_new = jax.random.normal(k4, (B, H, T, D), dtype=jnp.float32)
    # Non-contiguous positions exercise the general index_copy_ scatter path.
    input_pos = jnp.array([0, 2, 4, 6, 9, 11, 13, 15], dtype=jnp.int32)

    k_out, v_out = kv_cache_update(k_cache, v_cache, input_pos, k_new, v_new,
                                   tokens_per_block=4)
    k_out, v_out = jax.block_until_ready((k_out, v_out))

    # Reference: torch's cache.index_copy_(2, input_pos, new)
    k_ref = k_cache.at[:, :, input_pos, :].set(k_new)
    v_ref = v_cache.at[:, :, input_pos, :].set(v_new)

    assert k_out.shape == (B, H, S, D) and v_out.shape == (B, H, S, D)
    assert jnp.array_equal(k_out, k_ref), "k cache mismatch"
    assert jnp.array_equal(v_out, v_ref), "v cache mismatch"

    # Zero-initialised cache path (reset_parameters) with a single-chunk grid.
    kz, vz = kv_cache_init((B, H, S, D), (B, H, S, D))
    kz2, vz2 = kv_cache_update(kz, vz, input_pos, k_new, v_new,
                               tokens_per_block=8)
    kz2, vz2 = jax.block_until_ready((kz2, vz2))
    assert jnp.array_equal(kz2, jnp.zeros_like(kz).at[:, :, input_pos, :].set(k_new))
    assert jnp.array_equal(vz2, jnp.zeros_like(vz).at[:, :, input_pos, :].set(v_new))

    print("KERNEL_OK")
</pallas_src>

<mosaic_0001>
module attributes {stable_mosaic.version = 11 : i64} {
  func.func @_kv_cache_update_kernel(%arg0: i32, %arg1: memref<8xi32, #tpu.memory_space<smem>>, %arg2: memref<2x4x8x128xf32, #tpu.memory_space<any>>, %arg3: memref<2x4x8x128xf32, #tpu.memory_space<any>>, %arg4: memref<2x4x16x128xf32, #tpu.memory_space<any>>, %arg5: memref<2x4x16x128xf32, #tpu.memory_space<any>>, %arg6: memref<2x4x16x128xf32, #tpu.memory_space<any>>, %arg7: memref<2x4x16x128xf32, #tpu.memory_space<any>>, %arg8: memref<4x2x4x1x128xf32, #tpu.memory_space<vmem>>, %arg9: memref<4x2x4x1x128xf32, #tpu.memory_space<vmem>>, %arg10: memref<2x4x!tpu.dma_semaphore, #tpu.memory_space<semaphore_mem>>) attributes {dimension_semantics = [#tpu.dimension_semantics<arbitrary>], iteration_bounds = array<i64: 2>, scalar_prefetch = 1 : i64, scratch_operands = 3 : i64, tpu.core_type = #tpu.core_type<tc>, window_params = [{}, {}, {}, {}, {}, {}]} {
    %c4_i32 = arith.constant 4 : i32
    %0 = arith.muli %arg0, %c4_i32 : i32
    %c0_i32 = arith.constant 0 : i32
    %1 = arith.addi %0, %c0_i32 : i32
    %c8_i32 = arith.constant 8 : i32
    %2 = arith.cmpi slt, %1, %c8_i32 : i32
    %3 = arith.extui %2 : i1 to i32
    %c0_i32_0 = arith.constant 0 : i32
    %4 = arith.cmpi ne, %3, %c0_i32_0 : i32
    scf.if %4 {
      %c0_i32_43 = arith.constant 0 : i32
      %65 = arith.addi %0, %c0_i32_43 : i32
      %c0_i32_44 = arith.constant 0 : i32
      %c0_i32_45 = arith.constant 0 : i32
      %c0_i32_46 = arith.constant 0 : i32
      %c0_i32_47 = arith.constant 0 : i32
      %c0_i32_48 = arith.constant 0 : i32
      %c0_i32_49 = arith.constant 0 : i32
      %66 = tpu.memref_slice %arg2[%c0_i32_47, %c0_i32_48, %65, %c0_i32_49] : memref<2x4x8x128xf32, #tpu.memory_space<any>> -> memref<2x4x1x128xf32, #tpu.memory_space<any>>
      %c0_i32_50 = arith.constant 0 : i32
      %c0_i32_51 = arith.constant 0 : i32
      %c0_i32_52 = arith.constant 0 : i32
      %c0_i32_53 = arith.constant 0 : i32
      %67 = tpu.memref_slice %arg8[%c0_i32_44, %c0_i32_50, %c0_i32_51, %c0_i32_52, %c0_i32_53] : memref<4x2x4x1x128xf32, #tpu.memory_space<vmem>> -> memref<1x2x4x1x128xf32, #tpu.memory_space<vmem>>
      %68 = tpu.memref_squeeze %67 : memref<1x2x4x1x128xf32, #tpu.memory_space<vmem>> -> memref<2x4x1x128xf32, #tpu.memory_space<vmem>>
      %69 = tpu.memref_slice %arg10[%c0_i32_45, %c0_i32_46] : memref<2x4x!tpu.dma_semaphore, #tpu.memory_space<semaphore_mem>> -> memref<1x1x!tpu.dma_semaphore, #tpu.memory_space<semaphore_mem>>
      %70 = tpu.memref_squeeze %69 : memref<1x1x!tpu.dma_semaphore, #tpu.memory_space<semaphore_mem>> -> memref<!tpu.dma_semaphore, #tpu.memory_space<semaphore_mem>>
      tpu.enqueue_dma source(%66 : memref<2x4x1x128xf32, #tpu.memory_space<any>>) target(%68 : memref<2x4x1x128xf32, #tpu.memory_space<vmem>>) target_semaphore(%70 : memref<!tpu.dma_semaphore, #tpu.memory_space<semaphore_mem>>)
      %c0_i32_54 = arith.constant 0 : i32
      %c1_i32_55 = arith.constant 1 : i32
      %c0_i32_56 = arith.constant 0 : i32
      %c0_i32_57 = arith.constant 0 : i32
      %c0_i32_58 = arith.constant 0 : i32
      %c0_i32_59 = arith.constant 0 : i32
      %71 = tpu.memref_slice %arg3[%c0_i32_57, %c0_i32_58, %65, %c0_i32_59] : memref<2x4x8x128xf32, #tpu.memory_space<any>> -> memref<2x4x1x128xf32, #tpu.memory_space<any>>
      %c0_i32_60 = arith.constant 0 : i32
      %c0_i32_61 = arith.constant 0 : i32
      %c0_i32_62 = arith.constant 0 : i32
      %c0_i32_63 = arith.constant 0 : i32
      %72 = tpu.memref_slice %arg9[%c0_i32_54, %c0_i32_60, %c0_i32_61, %c0_i32_62, %c0_i32_63] : memref<4x2x4x1x128xf32, #tpu.memory_space<vmem>> -> memref<1x2x4x1x128xf32, #tpu.memory_space<vmem>>
      %73 = tpu.memref_squeeze %72 : memref<1x2x4x1x128xf32, #tpu.memory_space<vmem>> -> memref<2x4x1x128xf32, #tpu.memory_space<vmem>>
      %74 = tpu.memref_slice %arg10[%c1_i32_55, %c0_i32_56] : memref<2x4x!tpu.dma_semaphore, #tpu.memory_space<semaphore_mem>> -> memref<1x1x!tpu.dma_semaphore, #tpu.memory_space<semaphore_mem>>
      %75 = tpu.memref_squeeze %74 : memref<1x1x!tpu.dma_semaphore, #tpu.memory_space<semaphore_mem>> -> memref<!tpu.dma_semaphore, #tpu.memory_space<semaphore_mem>>
      tpu.enqueue_dma source(%71 : memref<2x4x1x128xf32, #tpu.memory_space<any>>) target(%73 : memref<2x4x1x128xf32, #tpu.memory_space<vmem>>) target_semaphore(%75 : memref<!tpu.dma_semaphore, #tpu.memory_space<semaphore_mem>>)
    } else {
    }
    %c1_i32 = arith.constant 1 : i32
    %5 = arith.addi %0, %c1_i32 : i32
    %c8_i32_1 = arith.constant 8 : i32
    %6 = arith.cmpi slt, %5, %c8_i32_1 : i32
    %7 = arith.extui %6 : i1 to i32
    %c0_i32_2 = arith.constant 0 : i32
    %8 = arith.cmpi ne, %7, %c0_i32_2 : i32
    scf.if %8 {
      %c1_i32_43 = arith.constant 1 : i32
      %65 = arith.addi %0, %c1_i32_43 : i32
      %c1_i32_44 = arith.constant 1 : i32
      %c0_i32_45 = arith.constant 0 : i32
      %c1_i32_46 = arith.constant 1 : i32
      %c0_i32_47 = arith.constant 0 : i32
      %c0_i32_48 = arith.constant 0 : i32
      %c0_i32_49 = arith.constant 0 : i32
      %66 = tpu.memref_slice %arg2[%c0_i32_47, %c0_i32_48, %65, %c0_i32_49] : memref<2x4x8x128xf32, #tpu.memory_space<any>> -> memref<2x4x1x128xf32, #tpu.memory_space<any>>
      %c0_i32_50 = arith.constant 0 : i32
      %c0_i32_51 = arith.constant 0 : i32
      %c0_i32_52 = arith.constant 0 : i32
      %c0_i32_53 = arith.constant 0 : i32
      %67 = tpu.memref_slice %arg8[%c1_i32_44, %c0_i32_50, %c0_i32_51, %c0_i32_52, %c0_i32_53] : memref<4x2x4x1x128xf32, #tpu.memory_space<vmem>> -> memref<1x2x4x1x128xf32, #tpu.memory_space<vmem>>
      %68 = tpu.memref_squeeze %67 : memref<1x2x4x1x128xf32, #tpu.memory_space<vmem>> -> memref<2x4x1x128xf32, #tpu.memory_space<vmem>>
      %69 = tpu.memref_slice %arg10[%c0_i32_45, %c1_i32_46] : memref<2x4x!tpu.dma_semaphore, #tpu.memory_space<semaphore_mem>> -> memref<1x1x!tpu.dma_semaphore, #tpu.memory_space<semaphore_mem>>
      %70 = tpu.memref_squeeze %69 : memref<1x1x!tpu.dma_semaphore, #tpu.memory_space<semaphore_mem>> -> memref<!tpu.dma_semaphore, #tpu.memory_space<semaphore_mem>>
      tpu.enqueue_dma source(%66 : memref<2x4x1x128xf32, #tpu.memory_space<any>>) target(%68 : memref<2x4x1x128xf32, #tpu.memory_space<vmem>>) target_semaphore(%70 : memref<!tpu.dma_semaphore, #tpu.memory_space<semaphore_mem>>)
      %c1_i32_54 = arith.constant 1 : i32
      %c1_i32_55 = arith.constant 1 : i32
      %c1_i32_56 = arith.constant 1 : i32
      %c0_i32_57 = arith.constant 0 : i32
      %c0_i32_58 = arith.constant 0 : i32
      %c0_i32_59 = arith.constant 0 : i32
      %71 = tpu.memref_slice %arg3[%c0_i32_57, %c0_i32_58, %65, %c0_i32_59] : memref<2x4x8x128xf32, #tpu.memory_space<any>> -> memref<2x4x1x128xf32, #tpu.memory_space<any>>
      %c0_i32_60 = arith.constant 0 : i32
      %c0_i32_61 = arith.constant 0 : i32
      %c0_i32_62 = arith.constant 0 : i32
      %c0_i32_63 = arith.constant 0 : i32
      %72 = tpu.memref_slice %arg9[%c1_i32_54, %c0_i32_60, %c0_i32_61, %c0_i32_62, %c0_i32_63] : memref<4x2x4x1x128xf32, #tpu.memory_space<vmem>> -> memref<1x2x4x1x128xf32, #tpu.memory_space<vmem>>
      %73 = tpu.memref_squeeze %72 : memref<1x2x4x1x128xf32, #tpu.memory_space<vmem>> -> memref<2x4x1x128xf32, #tpu.memory_space<vmem>>
      %74 = tpu.memref_slice %arg10[%c1_i32_55, %c1_i32_56] : memref<2x4x!tpu.dma_semaphore, #tpu.memory_space<semaphore_mem>> -> memref<1x1x!tpu.dma_semaphore, #tpu.memory_space<semaphore_mem>>
      %75 = tpu.memref_squeeze %74 : memref<1x1x!tpu.dma_semaphore, #tpu.memory_space<semaphore_mem>> -> memref<!tpu.dma_semaphore, #tpu.memory_space<semaphore_mem>>
      tpu.enqueue_dma source(%71 : memref<2x4x1x128xf32, #tpu.memory_space<any>>) target(%73 : memref<2x4x1x128xf32, #tpu.memory_space<vmem>>) target_semaphore(%75 : memref<!tpu.dma_semaphore, #tpu.memory_space<semaphore_mem>>)
    } else {
    }
    %c2_i32 = arith.constant 2 : i32
    %9 = arith.addi %0, %c2_i32 : i32
    %c8_i32_3 = arith.constant 8 : i32
    %10 = arith.cmpi slt, %9, %c8_i32_3 : i32
    %11 = arith.extui %10 : i1 to i32
    %c0_i32_4 = arith.constant 0 : i32
    %12 = arith.cmpi ne, %11, %c0_i32_4 : i32
    scf.if %12 {
      %c2_i32_43 = arith.constant 2 : i32
      %65 = arith.addi %0, %c2_i32_43 : i32
      %c2_i32_44 = arith.constant 2 : i32
      %c0_i32_45 = arith.constant 0 : i32
      %c2_i32_46 = arith.constant 2 : i32
      %c0_i32_47 = arith.constant 0 : i32
      %c0_i32_48 = arith.constant 0 : i32
      %c0_i32_49 = arith.constant 0 : i32
      %66 = tpu.memref_slice %arg2[%c0_i32_47, %c0_i32_48, %65, %c0_i32_49] : memref<2x4x8x128xf32, #tpu.memory_space<any>> -> memref<2x4x1x128xf32, #tpu.memory_space<any>>
      %c0_i32_50 = arith.constant 0 : i32
      %c0_i32_51 = arith.constant 0 : i32
      %c0_i32_52 = arith.constant 0 : i32
      %c0_i32_53 = arith.constant 0 : i32
      %67 = tpu.memref_slice %arg8[%c2_i32_44, %c0_i32_50, %c0_i32_51, %c0_i32_52, %c0_i32_53] : memref<4x2x4x1x128xf32, #tpu.memory_space<vmem>> -> memref<1x2x4x1x128xf32, #tpu.memory_space<vmem>>
      %68 = tpu.memref_squeeze %67 : memref<1x2x4x1x128xf32, #tpu.memory_space<vmem>> -> memref<2x4x1x128xf32, #tpu.memory_space<vmem>>
      %69 = tpu.memref_slice %arg10[%c0_i32_45, %c2_i32_46] : memref<2x4x!tpu.dma_semaphore, #tpu.memory_space<semaphore_mem>> -> memref<1x1x!tpu.dma_semaphore, #tpu.memory_space<semaphore_mem>>
      %70 = tpu.memref_squeeze %69 : memref<1x1x!tpu.dma_semaphore, #tpu.memory_space<semaphore_mem>> -> memref<!tpu.dma_semaphore, #tpu.memory_space<semaphore_mem>>
      tpu.enqueue_dma source(%66 : memref<2x4x1x128xf32, #tpu.memory_space<any>>) target(%68 : memref<2x4x1x128xf32, #tpu.memory_space<vmem>>) target_semaphore(%70 : memref<!tpu.dma_semaphore, #tpu.memory_space<semaphore_mem>>)
      %c2_i32_54 = arith.constant 2 : i32
      %c1_i32_55 = arith.constant 1 : i32
      %c2_i32_56 = arith.constant 2 : i32
      %c0_i32_57 = arith.constant 0 : i32
      %c0_i32_58 = arith.constant 0 : i32
      %c0_i32_59 = arith.constant 0 : i32
      %71 = tpu.memref_slice %arg3[%c0_i32_57, %c0_i32_58, %65, %c0_i32_59] : memref<2x4x8x128xf32, #tpu.memory_space<any>> -> memref<2x4x1x128xf32, #tpu.memory_space<any>>
      %c0_i32_60 = arith.constant 0 : i32
      %c0_i32_61 = arith.constant 0 : i32
      %c0_i32_62 = arith.constant 0 : i32
      %c0_i32_63 = arith.constant 0 : i32
      %72 = tpu.memref_slice %arg9[%c2_i32_54, %c0_i32_60, %c0_i32_61, %c0_i32_62, %c0_i32_63] : memref<4x2x4x1x128xf32, #tpu.memory_space<vmem>> -> memref<1x2x4x1x128xf32, #tpu.memory_space<vmem>>
      %73 = tpu.memref_squeeze %72 : memref<1x2x4x1x128xf32, #tpu.memory_space<vmem>> -> memref<2x4x1x128xf32, #tpu.memory_space<vmem>>
      %74 = tpu.memref_slice %arg10[%c1_i32_55, %c2_i32_56] : memref<2x4x!tpu.dma_semaphore, #tpu.memory_space<semaphore_mem>> -> memref<1x1x!tpu.dma_semaphore, #tpu.memory_space<semaphore_mem>>
      %75 = tpu.memref_squeeze %74 : memref<1x1x!tpu.dma_semaphore, #tpu.memory_space<semaphore_mem>> -> memref<!tpu.dma_semaphore, #tpu.memory_space<semaphore_mem>>
      tpu.enqueue_dma source(%71 : memref<2x4x1x128xf32, #tpu.memory_space<any>>) target(%73 : memref<2x4x1x128xf32, #tpu.memory_space<vmem>>) target_semaphore(%75 : memref<!tpu.dma_semaphore, #tpu.memory_space<semaphore_mem>>)
    } else {
    }
    %c3_i32 = arith.constant 3 : i32
    %13 = arith.addi %0, %c3_i32 : i32
    %c8_i32_5 = arith.constant 8 : i32
    %14 = arith.cmpi slt, %13, %c8_i32_5 : i32
    %15 = arith.extui %14 : i1 to i32
    %c0_i32_6 = arith.constant 0 : i32
    %16 = arith.cmpi ne, %15, %c0_i32_6 : i32
    scf.if %16 {
      %c3_i32_43 = arith.constant 3 : i32
      %65 = arith.addi %0, %c3_i32_43 : i32
      %c3_i32_44 = arith.constant 3 : i32
      %c0_i32_45 = arith.constant 0 : i32
      %c3_i32_46 = arith.constant 3 : i32
      %c0_i32_47 = arith.constant 0 : i32
      %c0_i32_48 = arith.constant 0 : i32
      %c0_i32_49 = arith.constant 0 : i32
      %66 = tpu.memref_slice %arg2[%c0_i32_47, %c0_i32_48, %65, %c0_i32_49] : memref<2x4x8x128xf32, #tpu.memory_space<any>> -> memref<2x4x1x128xf32, #tpu.memory_space<any>>
      %c0_i32_50 = arith.constant 0 : i32
      %c0_i32_51 = arith.constant 0 : i32
      %c0_i32_52 = arith.constant 0 : i32
      %c0_i32_53 = arith.constant 0 : i32
      %67 = tpu.memref_slice %arg8[%c3_i32_44, %c0_i32_50, %c0_i32_51, %c0_i32_52, %c0_i32_53] : memref<4x2x4x1x128xf32, #tpu.memory_space<vmem>> -> memref<1x2x4x1x128xf32, #tpu.memory_space<vmem>>
      %68 = tpu.memref_squeeze %67 : memref<1x2x4x1x128xf32, #tpu.memory_space<vmem>> -> memref<2x4x1x128xf32, #tpu.memory_space<vmem>>
      %69 = tpu.memref_slice %arg10[%c0_i32_45, %c3_i32_46] : memref<2x4x!tpu.dma_semaphore, #tpu.memory_space<semaphore_mem>> -> memref<1x1x!tpu.dma_semaphore, #tpu.memory_space<semaphore_mem>>
      %70 = tpu.memref_squeeze %69 : memref<1x1x!tpu.dma_semaphore, #tpu.memory_space<semaphore_mem>> -> memref<!tpu.dma_semaphore, #tpu.memory_space<semaphore_mem>>
      tpu.enqueue_dma source(%66 : memref<2x4x1x128xf32, #tpu.memory_space<any>>) target(%68 : memref<2x4x1x128xf32, #tpu.memory_space<vmem>>) target_semaphore(%70 : memref<!tpu.dma_semaphore, #tpu.memory_space<semaphore_mem>>)
      %c3_i32_54 = arith.constant 3 : i32
      %c1_i32_55 = arith.constant 1 : i32
      %c3_i32_56 = arith.constant 3 : i32
      %c0_i32_57 = arith.constant 0 : i32
      %c0_i32_58 = arith.constant 0 : i32
      %c0_i32_59 = arith.constant 0 : i32
      %71 = tpu.memref_slice %arg3[%c0_i32_57, %c0_i32_58, %65, %c0_i32_59] : memref<2x4x8x128xf32, #tpu.memory_space<any>> -> memref<2x4x1x128xf32, #tpu.memory_space<any>>
      %c0_i32_60 = arith.constant 0 : i32
      %c0_i32_61 = arith.constant 0 : i32
      %c0_i32_62 = arith.constant 0 : i32
      %c0_i32_63 = arith.constant 0 : i32
      %72 = tpu.memref_slice %arg9[%c3_i32_54, %c0_i32_60, %c0_i32_61, %c0_i32_62, %c0_i32_63] : memref<4x2x4x1x128xf32, #tpu.memory_space<vmem>> -> memref<1x2x4x1x128xf32, #tpu.memory_space<vmem>>
      %73 = tpu.memref_squeeze %72 : memref<1x2x4x1x128xf32, #tpu.memory_space<vmem>> -> memref<2x4x1x128xf32, #tpu.memory_space<vmem>>
      %74 = tpu.memref_slice %arg10[%c1_i32_55, %c3_i32_56] : memref<2x4x!tpu.dma_semaphore, #tpu.memory_space<semaphore_mem>> -> memref<1x1x!tpu.dma_semaphore, #tpu.memory_space<semaphore_mem>>
      %75 = tpu.memref_squeeze %74 : memref<1x1x!tpu.dma_semaphore, #tpu.memory_space<semaphore_mem>> -> memref<!tpu.dma_semaphore, #tpu.memory_space<semaphore_mem>>
      tpu.enqueue_dma source(%71 : memref<2x4x1x128xf32, #tpu.memory_space<any>>) target(%73 : memref<2x4x1x128xf32, #tpu.memory_space<vmem>>) target_semaphore(%75 : memref<!tpu.dma_semaphore, #tpu.memory_space<semaphore_mem>>)
    } else {
    }
    %c0_i32_7 = arith.constant 0 : i32
    %17 = arith.addi %0, %c0_i32_7 : i32
    %c8_i32_8 = arith.constant 8 : i32
    %18 = arith.cmpi slt, %17, %c8_i32_8 : i32
    %19 = arith.extui %18 : i1 to i32
    %c0_i32_9 = arith.constant 0 : i32
    %20 = arith.cmpi ne, %19, %c0_i32_9 : i32
    scf.if %20 {
      %c0_i32_43 = arith.constant 0 : i32
      %65 = arith.addi %0, %c0_i32_43 : i32
      %c0_i32_44 = arith.constant 0 : i32
      %c0_i32_45 = arith.constant 0 : i32
      %c0_i32_46 = arith.constant 0 : i32
      %c0_i32_47 = arith.constant 0 : i32
      %c0_i32_48 = arith.constant 0 : i32
      %c0_i32_49 = arith.constant 0 : i32
      %66 = tpu.memref_slice %arg2[%c0_i32_47, %c0_i32_48, %65, %c0_i32_49] : memref<2x4x8x128xf32, #tpu.memory_space<any>> -> memref<2x4x1x128xf32, #tpu.memory_space<any>>
      %c0_i32_50 = arith.constant 0 : i32
      %c0_i32_51 = arith.constant 0 : i32
      %c0_i32_52 = arith.constant 0 : i32
      %c0_i32_53 = arith.constant 0 : i32
      %67 = tpu.memref_slice %arg8[%c0_i32_44, %c0_i32_50, %c0_i32_51, %c0_i32_52, %c0_i32_53] : memref<4x2x4x1x128xf32, #tpu.memory_space<vmem>> -> memref<1x2x4x1x128xf32, #tpu.memory_space<vmem>>
      %68 = tpu.memref_squeeze %67 : memref<1x2x4x1x128xf32, #tpu.memory_space<vmem>> -> memref<2x4x1x128xf32, #tpu.memory_space<vmem>>
      %69 = tpu.memref_slice %arg10[%c0_i32_45, %c0_i32_46] : memref<2x4x!tpu.dma_semaphore, #tpu.memory_space<semaphore_mem>> -> memref<1x1x!tpu.dma_semaphore, #tpu.memory_space<semaphore_mem>>
      %70 = tpu.memref_squeeze %69 : memref<1x1x!tpu.dma_semaphore, #tpu.memory_space<semaphore_mem>> -> memref<!tpu.dma_semaphore, #tpu.memory_space<semaphore_mem>>
      tpu.wait_dma2 semaphore(%70 : memref<!tpu.dma_semaphore, #tpu.memory_space<semaphore_mem>>) src(%66 : memref<2x4x1x128xf32, #tpu.memory_space<any>>) dst(%68 : memref<2x4x1x128xf32, #tpu.memory_space<vmem>>)
      %c0_i32_54 = arith.constant 0 : i32
      %c1_i32_55 = arith.constant 1 : i32
      %c0_i32_56 = arith.constant 0 : i32
      %c0_i32_57 = arith.constant 0 : i32
      %c0_i32_58 = arith.constant 0 : i32
      %c0_i32_59 = arith.constant 0 : i32
      %71 = tpu.memref_slice %arg3[%c0_i32_57, %c0_i32_58, %65, %c0_i32_59] : memref<2x4x8x128xf32, #tpu.memory_space<any>> -> memref<2x4x1x128xf32, #tpu.memory_space<any>>
      %c0_i32_60 = arith.constant 0 : i32
      %c0_i32_61 = arith.constant 0 : i32
      %c0_i32_62 = arith.constant 0 : i32
      %c0_i32_63 = arith.constant 0 : i32
      %72 = tpu.memref_slice %arg9[%c0_i32_54, %c0_i32_60, %c0_i32_61, %c0_i32_62, %c0_i32_63] : memref<4x2x4x1x128xf32, #tpu.memory_space<vmem>> -> memref<1x2x4x1x128xf32, #tpu.memory_space<vmem>>
      %73 = tpu.memref_squeeze %72 : memref<1x2x4x1x128xf32, #tpu.memory_space<vmem>> -> memref<2x4x1x128xf32, #tpu.memory_space<vmem>>
      %74 = tpu.memref_slice %arg10[%c1_i32_55, %c0_i32_56] : memref<2x4x!tpu.dma_semaphore, #tpu.memory_space<semaphore_mem>> -> memref<1x1x!tpu.dma_semaphore, #tpu.memory_space<semaphore_mem>>
      %75 = tpu.memref_squeeze %74 : memref<1x1x!tpu.dma_semaphore, #tpu.memory_space<semaphore_mem>> -> memref<!tpu.dma_semaphore, #tpu.memory_space<semaphore_mem>>
      tpu.wait_dma2 semaphore(%75 : memref<!tpu.dma_semaphore, #tpu.memory_space<semaphore_mem>>) src(%71 : memref<2x4x1x128xf32, #tpu.memory_space<any>>) dst(%73 : memref<2x4x1x128xf32, #tpu.memory_space<vmem>>)
    } else {
    }
    %c1_i32_10 = arith.constant 1 : i32
    %21 = arith.addi %0, %c1_i32_10 : i32
    %c8_i32_11 = arith.constant 8 : i32
    %22 = arith.cmpi slt, %21, %c8_i32_11 : i32
    %23 = arith.extui %22 : i1 to i32
    %c0_i32_12 = arith.constant 0 : i32
    %24 = arith.cmpi ne, %23, %c0_i32_12 : i32
    scf.if %24 {
      %c1_i32_43 = arith.constant 1 : i32
      %65 = arith.addi %0, %c1_i32_43 : i32
      %c1_i32_44 = arith.constant 1 : i32
      %c0_i32_45 = arith.constant 0 : i32
      %c1_i32_46 = arith.constant 1 : i32
      %c0_i32_47 = arith.constant 0 : i32
      %c0_i32_48 = arith.constant 0 : i32
      %c0_i32_49 = arith.constant 0 : i32
      %66 = tpu.memref_slice %arg2[%c0_i32_47, %c0_i32_48, %65, %c0_i32_49] : memref<2x4x8x128xf32, #tpu.memory_space<any>> -> memref<2x4x1x128xf32, #tpu.memory_space<any>>
      %c0_i32_50 = arith.constant 0 : i32
      %c0_i32_51 = arith.constant 0 : i32
      %c0_i32_52 = arith.constant 0 : i32
      %c0_i32_53 = arith.constant 0 : i32
      %67 = tpu.memref_slice %arg8[%c1_i32_44, %c0_i32_50, %c0_i32_51, %c0_i32_52, %c0_i32_53] : memref<4x2x4x1x128xf32, #tpu.memory_space<vmem>> -> memref<1x2x4x1x128xf32, #tpu.memory_space<vmem>>
      %68 = tpu.memref_squeeze %67 : memref<1x2x4x1x128xf32, #tpu.memory_space<vmem>> -> memref<2x4x1x128xf32, #tpu.memory_space<vmem>>
      %69 = tpu.memref_slice %arg10[%c0_i32_45, %c1_i32_46] : memref<2x4x!tpu.dma_semaphore, #tpu.memory_space<semaphore_mem>> -> memref<1x1x!tpu.dma_semaphore, #tpu.memory_space<semaphore_mem>>
      %70 = tpu.memref_squeeze %69 : memref<1x1x!tpu.dma_semaphore, #tpu.memory_space<semaphore_mem>> -> memref<!tpu.dma_semaphore, #tpu.memory_space<semaphore_mem>>
      tpu.wait_dma2 semaphore(%70 : memref<!tpu.dma_semaphore, #tpu.memory_space<semaphore_mem>>) src(%66 : memref<2x4x1x128xf32, #tpu.memory_space<any>>) dst(%68 : memref<2x4x1x128xf32, #tpu.memory_space<vmem>>)
      %c1_i32_54 = arith.constant 1 : i32
      %c1_i32_55 = arith.constant 1 : i32
      %c1_i32_56 = arith.constant 1 : i32
      %c0_i32_57 = arith.constant 0 : i32
      %c0_i32_58 = arith.constant 0 : i32
      %c0_i32_59 = arith.constant 0 : i32
      %71 = tpu.memref_slice %arg3[%c0_i32_57, %c0_i32_58, %65, %c0_i32_59] : memref<2x4x8x128xf32, #tpu.memory_space<any>> -> memref<2x4x1x128xf32, #tpu.memory_space<any>>
      %c0_i32_60 = arith.constant 0 : i32
      %c0_i32_61 = arith.constant 0 : i32
      %c0_i32_62 = arith.constant 0 : i32
      %c0_i32_63 = arith.constant 0 : i32
      %72 = tpu.memref_slice %arg9[%c1_i32_54, %c0_i32_60, %c0_i32_61, %c0_i32_62, %c0_i32_63] : memref<4x2x4x1x128xf32, #tpu.memory_space<vmem>> -> memref<1x2x4x1x128xf32, #tpu.memory_space<vmem>>
      %73 = tpu.memref_squeeze %72 : memref<1x2x4x1x128xf32, #tpu.memory_space<vmem>> -> memref<2x4x1x128xf32, #tpu.memory_space<vmem>>
      %74 = tpu.memref_slice %arg10[%c1_i32_55, %c1_i32_56] : memref<2x4x!tpu.dma_semaphore, #tpu.memory_space<semaphore_mem>> -> memref<1x1x!tpu.dma_semaphore, #tpu.memory_space<semaphore_mem>>
      %75 = tpu.memref_squeeze %74 : memref<1x1x!tpu.dma_semaphore, #tpu.memory_space<semaphore_mem>> -> memref<!tpu.dma_semaphore, #tpu.memory_space<semaphore_mem>>
      tpu.wait_dma2 semaphore(%75 : memref<!tpu.dma_semaphore, #tpu.memory_space<semaphore_mem>>) src(%71 : memref<2x4x1x128xf32, #tpu.memory_space<any>>) dst(%73 : memref<2x4x1x128xf32, #tpu.memory_space<vmem>>)
    } else {
    }
    %c2_i32_13 = arith.constant 2 : i32
    %25 = arith.addi %0, %c2_i32_13 : i32
    %c8_i32_14 = arith.constant 8 : i32
    %26 = arith.cmpi slt, %25, %c8_i32_14 : i32
    %27 = arith.extui %26 : i1 to i32
    %c0_i32_15 = arith.constant 0 : i32
    %28 = arith.cmpi ne, %27, %c0_i32_15 : i32
    scf.if %28 {
      %c2_i32_43 = arith.constant 2 : i32
      %65 = arith.addi %0, %c2_i32_43 : i32
      %c2_i32_44 = arith.constant 2 : i32
      %c0_i32_45 = arith.constant 0 : i32
      %c2_i32_46 = arith.constant 2 : i32
      %c0_i32_47 = arith.constant 0 : i32
      %c0_i32_48 = arith.constant 0 : i32
      %c0_i32_49 = arith.constant 0 : i32
      %66 = tpu.memref_slice %arg2[%c0_i32_47, %c0_i32_48, %65, %c0_i32_49] : memref<2x4x8x128xf32, #tpu.memory_space<any>> -> memref<2x4x1x128xf32, #tpu.memory_space<any>>
      %c0_i32_50 = arith.constant 0 : i32
      %c0_i32_51 = arith.constant 0 : i32
      %c0_i32_52 = arith.constant 0 : i32
      %c0_i32_53 = arith.constant 0 : i32
      %67 = tpu.memref_slice %arg8[%c2_i32_44, %c0_i32_50, %c0_i32_51, %c0_i32_52, %c0_i32_53] : memref<4x2x4x1x128xf32, #tpu.memory_space<vmem>> -> memref<1x2x4x1x128xf32, #tpu.memory_space<vmem>>
      %68 = tpu.memref_squeeze %67 : memref<1x2x4x1x128xf32, #tpu.memory_space<vmem>> -> memref<2x4x1x128xf32, #tpu.memory_space<vmem>>
      %69 = tpu.memref_slice %arg10[%c0_i32_45, %c2_i32_46] : memref<2x4x!tpu.dma_semaphore, #tpu.memory_space<semaphore_mem>> -> memref<1x1x!tpu.dma_semaphore, #tpu.memory_space<semaphore_mem>>
      %70 = tpu.memref_squeeze %69 : memref<1x1x!tpu.dma_semaphore, #tpu.memory_space<semaphore_mem>> -> memref<!tpu.dma_semaphore, #tpu.memory_space<semaphore_mem>>
      tpu.wait_dma2 semaphore(%70 : memref<!tpu.dma_semaphore, #tpu.memory_space<semaphore_mem>>) src(%66 : memref<2x4x1x128xf32, #tpu.memory_space<any>>) dst(%68 : memref<2x4x1x128xf32, #tpu.memory_space<vmem>>)
      %c2_i32_54 = arith.constant 2 : i32
      %c1_i32_55 = arith.constant 1 : i32
      %c2_i32_56 = arith.constant 2 : i32
      %c0_i32_57 = arith.constant 0 : i32
      %c0_i32_58 = arith.constant 0 : i32
      %c0_i32_59 = arith.constant 0 : i32
      %71 = tpu.memref_slice %arg3[%c0_i32_57, %c0_i32_58, %65, %c0_i32_59] : memref<2x4x8x128xf32, #tpu.memory_space<any>> -> memref<2x4x1x128xf32, #tpu.memory_space<any>>
      %c0_i32_60 = arith.constant 0 : i32
      %c0_i32_61 = arith.constant 0 : i32
      %c0_i32_62 = arith.constant 0 : i32
      %c0_i32_63 = arith.constant 0 : i32
      %72 = tpu.memref_slice %arg9[%c2_i32_54, %c0_i32_60, %c0_i32_61, %c0_i32_62, %c0_i32_63] : memref<4x2x4x1x128xf32, #tpu.memory_space<vmem>> -> memref<1x2x4x1x128xf32, #tpu.memory_space<vmem>>
      %73 = tpu.memref_squeeze %72 : memref<1x2x4x1x128xf32, #tpu.memory_space<vmem>> -> memref<2x4x1x128xf32, #tpu.memory_space<vmem>>
      %74 = tpu.memref_slice %arg10[%c1_i32_55, %c2_i32_56] : memref<2x4x!tpu.dma_semaphore, #tpu.memory_space<semaphore_mem>> -> memref<1x1x!tpu.dma_semaphore, #tpu.memory_space<semaphore_mem>>
      %75 = tpu.memref_squeeze %74 : memref<1x1x!tpu.dma_semaphore, #tpu.memory_space<semaphore_mem>> -> memref<!tpu.dma_semaphore, #tpu.memory_space<semaphore_mem>>
      tpu.wait_dma2 semaphore(%75 : memref<!tpu.dma_semaphore, #tpu.memory_space<semaphore_mem>>) src(%71 : memref<2x4x1x128xf32, #tpu.memory_space<any>>) dst(%73 : memref<2x4x1x128xf32, #tpu.memory_space<vmem>>)
    } else {
    }
    %c3_i32_16 = arith.constant 3 : i32
    %29 = arith.addi %0, %c3_i32_16 : i32
    %c8_i32_17 = arith.constant 8 : i32
    %30 = arith.cmpi slt, %29, %c8_i32_17 : i32
    %31 = arith.extui %30 : i1 to i32
    %c0_i32_18 = arith.constant 0 : i32
    %32 = arith.cmpi ne, %31, %c0_i32_18 : i32
    scf.if %32 {
      %c3_i32_43 = arith.constant 3 : i32
      %65 = arith.addi %0, %c3_i32_43 : i32
      %c3_i32_44 = arith.constant 3 : i32
      %c0_i32_45 = arith.constant 0 : i32
      %c3_i32_46 = arith.constant 3 : i32
      %c0_i32_47 = arith.constant 0 : i32
      %c0_i32_48 = arith.constant 0 : i32
      %c0_i32_49 = arith.constant 0 : i32
      %66 = tpu.memref_slice %arg2[%c0_i32_47, %c0_i32_48, %65, %c0_i32_49] : memref<2x4x8x128xf32, #tpu.memory_space<any>> -> memref<2x4x1x128xf32, #tpu.memory_space<any>>
      %c0_i32_50 = arith.constant 0 : i32
      %c0_i32_51 = arith.constant 0 : i32
      %c0_i32_52 = arith.constant 0 : i32
      %c0_i32_53 = arith.constant 0 : i32
      %67 = tpu.memref_slice %arg8[%c3_i32_44, %c0_i32_50, %c0_i32_51, %c0_i32_52, %c0_i32_53] : memref<4x2x4x1x128xf32, #tpu.memory_space<vmem>> -> memref<1x2x4x1x128xf32, #tpu.memory_space<vmem>>
      %68 = tpu.memref_squeeze %67 : memref<1x2x4x1x128xf32, #tpu.memory_space<vmem>> -> memref<2x4x1x128xf32, #tpu.memory_space<vmem>>
      %69 = tpu.memref_slice %arg10[%c0_i32_45, %c3_i32_46] : memref<2x4x!tpu.dma_semaphore, #tpu.memory_space<semaphore_mem>> -> memref<1x1x!tpu.dma_semaphore, #tpu.memory_space<semaphore_mem>>
      %70 = tpu.memref_squeeze %69 : memref<1x1x!tpu.dma_semaphore, #tpu.memory_space<semaphore_mem>> -> memref<!tpu.dma_semaphore, #tpu.memory_space<semaphore_mem>>
      tpu.wait_dma2 semaphore(%70 : memref<!tpu.dma_semaphore, #tpu.memory_space<semaphore_mem>>) src(%66 : memref<2x4x1x128xf32, #tpu.memory_space<any>>) dst(%68 : memref<2x4x1x128xf32, #tpu.memory_space<vmem>>)
      %c3_i32_54 = arith.constant 3 : i32
      %c1_i32_55 = arith.constant 1 : i32
      %c3_i32_56 = arith.constant 3 : i32
      %c0_i32_57 = arith.constant 0 : i32
      %c0_i32_58 = arith.constant 0 : i32
      %c0_i32_59 = arith.constant 0 : i32
      %71 = tpu.memref_slice %arg3[%c0_i32_57, %c0_i32_58, %65, %c0_i32_59] : memref<2x4x8x128xf32, #tpu.memory_space<any>> -> memref<2x4x1x128xf32, #tpu.memory_space<any>>
      %c0_i32_60 = arith.constant 0 : i32
      %c0_i32_61 = arith.constant 0 : i32
      %c0_i32_62 = arith.constant 0 : i32
      %c0_i32_63 = arith.constant 0 : i32
      %72 = tpu.memref_slice %arg9[%c3_i32_54, %c0_i32_60, %c0_i32_61, %c0_i32_62, %c0_i32_63] : memref<4x2x4x1x128xf32, #tpu.memory_space<vmem>> -> memref<1x2x4x1x128xf32, #tpu.memory_space<vmem>>
      %73 = tpu.memref_squeeze %72 : memref<1x2x4x1x128xf32, #tpu.memory_space<vmem>> -> memref<2x4x1x128xf32, #tpu.memory_space<vmem>>
      %74 = tpu.memref_slice %arg10[%c1_i32_55, %c3_i32_56] : memref<2x4x!tpu.dma_semaphore, #tpu.memory_space<semaphore_mem>> -> memref<1x1x!tpu.dma_semaphore, #tpu.memory_space<semaphore_mem>>
      %75 = tpu.memref_squeeze %74 : memref<1x1x!tpu.dma_semaphore, #tpu.memory_space<semaphore_mem>> -> memref<!tpu.dma_semaphore, #tpu.memory_space<semaphore_mem>>
      tpu.wait_dma2 semaphore(%75 : memref<!tpu.dma_semaphore, #tpu.memory_space<semaphore_mem>>) src(%71 : memref<2x4x1x128xf32, #tpu.memory_space<any>>) dst(%73 : memref<2x4x1x128xf32, #tpu.memory_space<vmem>>)
    } else {
    }
    %c0_i32_19 = arith.constant 0 : i32
    %33 = arith.addi %0, %c0_i32_19 : i32
    %c8_i32_20 = arith.constant 8 : i32
    %34 = arith.cmpi slt, %33, %c8_i32_20 : i32
    %35 = arith.extui %34 : i1 to i32
    %c0_i32_21 = arith.constant 0 : i32
    %36 = arith.cmpi ne, %35, %c0_i32_21 : i32
    scf.if %36 {
      %c0_i32_43 = arith.constant 0 : i32
      %65 = arith.addi %0, %c0_i32_43 : i32
      %66 = arith.index_cast %65 : i32 to index
      %67 = memref.load %arg1[%66] : memref<8xi32, #tpu.memory_space<smem>>
      %c0_i32_44 = arith.constant 0 : i32
      %c0_i32_45 = arith.constant 0 : i32
      %c0_i32_46 = arith.constant 0 : i32
      %c0_i32_47 = arith.constant 0 : i32
      %c0_i32_48 = arith.constant 0 : i32
      %c0_i32_49 = arith.constant 0 : i32
      %c0_i32_50 = arith.constant 0 : i32
      %68 = tpu.memref_slice %arg8[%c0_i32_44, %c0_i32_47, %c0_i32_48, %c0_i32_49, %c0_i32_50] : memref<4x2x4x1x128xf32, #tpu.memory_space<vmem>> -> memref<1x2x4x1x128xf32, #tpu.memory_space<vmem>>
      %69 = tpu.memref_squeeze %68 : memref<1x2x4x1x128xf32, #tpu.memory_space<vmem>> -> memref<2x4x1x128xf32, #tpu.memory_space<vmem>>
      %c0_i32_51 = arith.constant 0 : i32
      %c0_i32_52 = arith.constant 0 : i32
      %c0_i32_53 = arith.constant 0 : i32
      %70 = tpu.memref_slice %arg6[%c0_i32_51, %c0_i32_52, %67, %c0_i32_53] : memref<2x4x16x128xf32, #tpu.memory_space<any>> -> memref<2x4x1x128xf32, #tpu.memory_space<any>>
      %71 = tpu.memref_slice %arg10[%c0_i32_45, %c0_i32_46] : memref<2x4x!tpu.dma_semaphore, #tpu.memory_space<semaphore_mem>> -> memref<1x1x!tpu.dma_semaphore, #tpu.memory_space<semaphore_mem>>
      %72 = tpu.memref_squeeze %71 : memref<1x1x!tpu.dma_semaphore, #tpu.memory_space<semaphore_mem>> -> memref<!tpu.dma_semaphore, #tpu.memory_space<semaphore_mem>>
      tpu.enqueue_dma source(%69 : memref<2x4x1x128xf32, #tpu.memory_space<vmem>>) target(%70 : memref<2x4x1x128xf32, #tpu.memory_space<any>>) target_semaphore(%72 : memref<!tpu.dma_semaphore, #tpu.memory_space<semaphore_mem>>)
      %c0_i32_54 = arith.constant 0 : i32
      %c1_i32_55 = arith.constant 1 : i32
      %c0_i32_56 = arith.constant 0 : i32
      %c0_i32_57 = arith.constant 0 : i32
      %c0_i32_58 = arith.constant 0 : i32
      %c0_i32_59 = arith.constant 0 : i32
      %c0_i32_60 = arith.constant 0 : i32
      %73 = tpu.memref_slice %arg9[%c0_i32_54, %c0_i32_57, %c0_i32_58, %c0_i32_59, %c0_i32_60] : memref<4x2x4x1x128xf32, #tpu.memory_space<vmem>> -> memref<1x2x4x1x128xf32, #tpu.memory_space<vmem>>
      %74 = tpu.memref_squeeze %73 : memref<1x2x4x1x128xf32, #tpu.memory_space<vmem>> -> memref<2x4x1x128xf32, #tpu.memory_space<vmem>>
      %c0_i32_61 = arith.constant 0 : i32
      %c0_i32_62 = arith.constant 0 : i32
      %c0_i32_63 = arith.constant 0 : i32
      %75 = tpu.memref_slice %arg7[%c0_i32_61, %c0_i32_62, %67, %c0_i32_63] : memref<2x4x16x128xf32, #tpu.memory_space<any>> -> memref<2x4x1x128xf32, #tpu.memory_space<any>>
      %76 = tpu.memref_slice %arg10[%c1_i32_55, %c0_i32_56] : memref<2x4x!tpu.dma_semaphore, #tpu.memory_space<semaphore_mem>> -> memref<1x1x!tpu.dma_semaphore, #tpu.memory_space<semaphore_mem>>
      %77 = tpu.memref_squeeze %76 : memref<1x1x!tpu.dma_semaphore, #tpu.memory_space<semaphore_mem>> -> memref<!tpu.dma_semaphore, #tpu.memory_space<semaphore_mem>>
      tpu.enqueue_dma source(%74 : memref<2x4x1x128xf32, #tpu.memory_space<vmem>>) target(%75 : memref<2x4x1x128xf32, #tpu.memory_space<any>>) target_semaphore(%77 : memref<!tpu.dma_semaphore, #tpu.memory_space<semaphore_mem>>)
    } else {
    }
    %c1_i32_22 = arith.constant 1 : i32
    %37 = arith.addi %0, %c1_i32_22 : i32
    %c8_i32_23 = arith.constant 8 : i32
    %38 = arith.cmpi slt, %37, %c8_i32_23 : i32
    %39 = arith.extui %38 : i1 to i32
    %c0_i32_24 = arith.constant 0 : i32
    %40 = arith.cmpi ne, %39, %c0_i32_24 : i32
    scf.if %40 {
      %c1_i32_43 = arith.constant 1 : i32
      %65 = arith.addi %0, %c1_i32_43 : i32
      %66 = arith.index_cast %65 : i32 to index
      %67 = memref.load %arg1[%66] : memref<8xi32, #tpu.memory_space<smem>>
      %c1_i32_44 = arith.constant 1 : i32
      %c0_i32_45 = arith.constant 0 : i32
      %c1_i32_46 = arith.constant 1 : i32
      %c0_i32_47 = arith.constant 0 : i32
      %c0_i32_48 = arith.constant 0 : i32
      %c0_i32_49 = arith.constant 0 : i32
      %c0_i32_50 = arith.constant 0 : i32
      %68 = tpu.memref_slice %arg8[%c1_i32_44, %c0_i32_47, %c0_i32_48, %c0_i32_49, %c0_i32_50] : memref<4x2x4x1x128xf32, #tpu.memory_space<vmem>> -> memref<1x2x4x1x128xf32, #tpu.memory_space<vmem>>
      %69 = tpu.memref_squeeze %68 : memref<1x2x4x1x128xf32, #tpu.memory_space<vmem>> -> memref<2x4x1x128xf32, #tpu.memory_space<vmem>>
      %c0_i32_51 = arith.constant 0 : i32
      %c0_i32_52 = arith.constant 0 : i32
      %c0_i32_53 = arith.constant 0 : i32
      %70 = tpu.memref_slice %arg6[%c0_i32_51, %c0_i32_52, %67, %c0_i32_53] : memref<2x4x16x128xf32, #tpu.memory_space<any>> -> memref<2x4x1x128xf32, #tpu.memory_space<any>>
      %71 = tpu.memref_slice %arg10[%c0_i32_45, %c1_i32_46] : memref<2x4x!tpu.dma_semaphore, #tpu.memory_space<semaphore_mem>> -> memref<1x1x!tpu.dma_semaphore, #tpu.memory_space<semaphore_mem>>
      %72 = tpu.memref_squeeze %71 : memref<1x1x!tpu.dma_semaphore, #tpu.memory_space<semaphore_mem>> -> memref<!tpu.dma_semaphore, #tpu.memory_space<semaphore_mem>>
      tpu.enqueue_dma source(%69 : memref<2x4x1x128xf32, #tpu.memory_space<vmem>>) target(%70 : memref<2x4x1x128xf32, #tpu.memory_space<any>>) target_semaphore(%72 : memref<!tpu.dma_semaphore, #tpu.memory_space<semaphore_mem>>)
      %c1_i32_54 = arith.constant 1 : i32
      %c1_i32_55 = arith.constant 1 : i32
      %c1_i32_56 = arith.constant 1 : i32
      %c0_i32_57 = arith.constant 0 : i32
      %c0_i32_58 = arith.constant 0 : i32
      %c0_i32_59 = arith.constant 0 : i32
      %c0_i32_60 = arith.constant 0 : i32
      %73 = tpu.memref_slice %arg9[%c1_i32_54, %c0_i32_57, %c0_i32_58, %c0_i32_59, %c0_i32_60] : memref<4x2x4x1x128xf32, #tpu.memory_space<vmem>> -> memref<1x2x4x1x128xf32, #tpu.memory_space<vmem>>
      %74 = tpu.memref_squeeze %73 : memref<1x2x4x1x128xf32, #tpu.memory_space<vmem>> -> memref<2x4x1x128xf32, #tpu.memory_space<vmem>>
      %c0_i32_61 = arith.constant 0 : i32
      %c0_i32_62 = arith.constant 0 : i32
      %c0_i32_63 = arith.constant 0 : i32
      %75 = tpu.memref_slice %arg7[%c0_i32_61, %c0_i32_62, %67, %c0_i32_63] : memref<2x4x16x128xf32, #tpu.memory_space<any>> -> memref<2x4x1x128xf32, #tpu.memory_space<any>>
      %76 = tpu.memref_slice %arg10[%c1_i32_55, %c1_i32_56] : memref<2x4x!tpu.dma_semaphore, #tpu.memory_space<semaphore_mem>> -> memref<1x1x!tpu.dma_semaphore, #tpu.memory_space<semaphore_mem>>
      %77 = tpu.memref_squeeze %76 : memref<1x1x!tpu.dma_semaphore, #tpu.memory_space<semaphore_mem>> -> memref<!tpu.dma_semaphore, #tpu.memory_space<semaphore_mem>>
      tpu.enqueue_dma source(%74 : memref<2x4x1x128xf32, #tpu.memory_space<vmem>>) target(%75 : memref<2x4x1x128xf32, #tpu.memory_space<any>>) target_semaphore(%77 : memref<!tpu.dma_semaphore, #tpu.memory_space<semaphore_mem>>)
    } else {
    }
    %c2_i32_25 = arith.constant 2 : i32
    %41 = arith.addi %0, %c2_i32_25 : i32
    %c8_i32_26 = arith.constant 8 : i32
    %42 = arith.cmpi slt, %41, %c8_i32_26 : i32
    %43 = arith.extui %42 : i1 to i32
    %c0_i32_27 = arith.constant 0 : i32
    %44 = arith.cmpi ne, %43, %c0_i32_27 : i32
    scf.if %44 {
      %c2_i32_43 = arith.constant 2 : i32
      %65 = arith.addi %0, %c2_i32_43 : i32
      %66 = arith.index_cast %65 : i32 to index
      %67 = memref.load %arg1[%66] : memref<8xi32, #tpu.memory_space<smem>>
      %c2_i32_44 = arith.constant 2 : i32
      %c0_i32_45 = arith.constant 0 : i32
      %c2_i32_46 = arith.constant 2 : i32
      %c0_i32_47 = arith.constant 0 : i32
      %c0_i32_48 = arith.constant 0 : i32
      %c0_i32_49 = arith.constant 0 : i32
      %c0_i32_50 = arith.constant 0 : i32
      %68 = tpu.memref_slice %arg8[%c2_i32_44, %c0_i32_47, %c0_i32_48, %c0_i32_49, %c0_i32_50] : memref<4x2x4x1x128xf32, #tpu.memory_space<vmem>> -> memref<1x2x4x1x128xf32, #tpu.memory_space<vmem>>
      %69 = tpu.memref_squeeze %68 : memref<1x2x4x1x128xf32, #tpu.memory_space<vmem>> -> memref<2x4x1x128xf32, #tpu.memory_space<vmem>>
      %c0_i32_51 = arith.constant 0 : i32
      %c0_i32_52 = arith.constant 0 : i32
      %c0_i32_53 = arith.constant 0 : i32
      %70 = tpu.memref_slice %arg6[%c0_i32_51, %c0_i32_52, %67, %c0_i32_53] : memref<2x4x16x128xf32, #tpu.memory_space<any>> -> memref<2x4x1x128xf32, #tpu.memory_space<any>>
      %71 = tpu.memref_slice %arg10[%c0_i32_45, %c2_i32_46] : memref<2x4x!tpu.dma_semaphore, #tpu.memory_space<semaphore_mem>> -> memref<1x1x!tpu.dma_semaphore, #tpu.memory_space<semaphore_mem>>
      %72 = tpu.memref_squeeze %71 : memref<1x1x!tpu.dma_semaphore, #tpu.memory_space<semaphore_mem>> -> memref<!tpu.dma_semaphore, #tpu.memory_space<semaphore_mem>>
      tpu.enqueue_dma source(%69 : memref<2x4x1x128xf32, #tpu.memory_space<vmem>>) target(%70 : memref<2x4x1x128xf32, #tpu.memory_space<any>>) target_semaphore(%72 : memref<!tpu.dma_semaphore, #tpu.memory_space<semaphore_mem>>)
      %c2_i32_54 = arith.constant 2 : i32
      %c1_i32_55 = arith.constant 1 : i32
      %c2_i32_56 = arith.constant 2 : i32
      %c0_i32_57 = arith.constant 0 : i32
      %c0_i32_58 = arith.constant 0 : i32
      %c0_i32_59 = arith.constant 0 : i32
      %c0_i32_60 = arith.constant 0 : i32
      %73 = tpu.memref_slice %arg9[%c2_i32_54, %c0_i32_57, %c0_i32_58, %c0_i32_59, %c0_i32_60] : memref<4x2x4x1x128xf32, #tpu.memory_space<vmem>> -> memref<1x2x4x1x128xf32, #tpu.memory_space<vmem>>
      %74 = tpu.memref_squeeze %73 : memref<1x2x4x1x128xf32, #tpu.memory_space<vmem>> -> memref<2x4x1x128xf32, #tpu.memory_space<vmem>>
      %c0_i32_61 = arith.constant 0 : i32
      %c0_i32_62 = arith.constant 0 : i32
      %c0_i32_63 = arith.constant 0 : i32
      %75 = tpu.memref_slice %arg7[%c0_i32_61, %c0_i32_62, %67, %c0_i32_63] : memref<2x4x16x128xf32, #tpu.memory_space<any>> -> memref<2x4x1x128xf32, #tpu.memory_space<any>>
      %76 = tpu.memref_slice %arg10[%c1_i32_55, %c2_i32_56] : memref<2x4x!tpu.dma_semaphore, #tpu.memory_space<semaphore_mem>> -> memref<1x1x!tpu.dma_semaphore, #tpu.memory_space<semaphore_mem>>
      %77 = tpu.memref_squeeze %76 : memref<1x1x!tpu.dma_semaphore, #tpu.memory_space<semaphore_mem>> -> memref<!tpu.dma_semaphore, #tpu.memory_space<semaphore_mem>>
      tpu.enqueue_dma source(%74 : memref<2x4x1x128xf32, #tpu.memory_space<vmem>>) target(%75 : memref<2x4x1x128xf32, #tpu.memory_space<any>>) target_semaphore(%77 : memref<!tpu.dma_semaphore, #tpu.memory_space<semaphore_mem>>)
    } else {
    }
    %c3_i32_28 = arith.constant 3 : i32
    %45 = arith.addi %0, %c3_i32_28 : i32
    %c8_i32_29 = arith.constant 8 : i32
    %46 = arith.cmpi slt, %45, %c8_i32_29 : i32
    %47 = arith.extui %46 : i1 to i32
    %c0_i32_30 = arith.constant 0 : i32
    %48 = arith.cmpi ne, %47, %c0_i32_30 : i32
    scf.if %48 {
      %c3_i32_43 = arith.constant 3 : i32
      %65 = arith.addi %0, %c3_i32_43 : i32
      %66 = arith.index_cast %65 : i32 to index
      %67 = memref.load %arg1[%66] : memref<8xi32, #tpu.memory_space<smem>>
      %c3_i32_44 = arith.constant 3 : i32
      %c0_i32_45 = arith.constant 0 : i32
      %c3_i32_46 = arith.constant 3 : i32
      %c0_i32_47 = arith.constant 0 : i32
      %c0_i32_48 = arith.constant 0 : i32
      %c0_i32_49 = arith.constant 0 : i32
      %c0_i32_50 = arith.constant 0 : i32
      %68 = tpu.memref_slice %arg8[%c3_i32_44, %c0_i32_47, %c0_i32_48, %c0_i32_49, %c0_i32_50] : memref<4x2x4x1x128xf32, #tpu.memory_space<vmem>> -> memref<1x2x4x1x128xf32, #tpu.memory_space<vmem>>
      %69 = tpu.memref_squeeze %68 : memref<1x2x4x1x128xf32, #tpu.memory_space<vmem>> -> memref<2x4x1x128xf32, #tpu.memory_space<vmem>>
      %c0_i32_51 = arith.constant 0 : i32
      %c0_i32_52 = arith.constant 0 : i32
      %c0_i32_53 = arith.constant 0 : i32
      %70 = tpu.memref_slice %arg6[%c0_i32_51, %c0_i32_52, %67, %c0_i32_53] : memref<2x4x16x128xf32, #tpu.memory_space<any>> -> memref<2x4x1x128xf32, #tpu.memory_space<any>>
      %71 = tpu.memref_slice %arg10[%c0_i32_45, %c3_i32_46] : memref<2x4x!tpu.dma_semaphore, #tpu.memory_space<semaphore_mem>> -> memref<1x1x!tpu.dma_semaphore, #tpu.memory_space<semaphore_mem>>
      %72 = tpu.memref_squeeze %71 : memref<1x1x!tpu.dma_semaphore, #tpu.memory_space<semaphore_mem>> -> memref<!tpu.dma_semaphore, #tpu.memory_space<semaphore_mem>>
      tpu.enqueue_dma source(%69 : memref<2x4x1x128xf32, #tpu.memory_space<vmem>>) target(%70 : memref<2x4x1x128xf32, #tpu.memory_space<any>>) target_semaphore(%72 : memref<!tpu.dma_semaphore, #tpu.memory_space<semaphore_mem>>)
      %c3_i32_54 = arith.constant 3 : i32
      %c1_i32_55 = arith.constant 1 : i32
      %c3_i32_56 = arith.constant 3 : i32
      %c0_i32_57 = arith.constant 0 : i32
      %c0_i32_58 = arith.constant 0 : i32
      %c0_i32_59 = arith.constant 0 : i32
      %c0_i32_60 = arith.constant 0 : i32
      %73 = tpu.memref_slice %arg9[%c3_i32_54, %c0_i32_57, %c0_i32_58, %c0_i32_59, %c0_i32_60] : memref<4x2x4x1x128xf32, #tpu.memory_space<vmem>> -> memref<1x2x4x1x128xf32, #tpu.memory_space<vmem>>
      %74 = tpu.memref_squeeze %73 : memref<1x2x4x1x128xf32, #tpu.memory_space<vmem>> -> memref<2x4x1x128xf32, #tpu.memory_space<vmem>>
      %c0_i32_61 = arith.constant 0 : i32
      %c0_i32_62 = arith.constant 0 : i32
      %c0_i32_63 = arith.constant 0 : i32
      %75 = tpu.memref_slice %arg7[%c0_i32_61, %c0_i32_62, %67, %c0_i32_63] : memref<2x4x16x128xf32, #tpu.memory_space<any>> -> memref<2x4x1x128xf32, #tpu.memory_space<any>>
      %76 = tpu.memref_slice %arg10[%c1_i32_55, %c3_i32_56] : memref<2x4x!tpu.dma_semaphore, #tpu.memory_space<semaphore_mem>> -> memref<1x1x!tpu.dma_semaphore, #tpu.memory_space<semaphore_mem>>
      %77 = tpu.memref_squeeze %76 : memref<1x1x!tpu.dma_semaphore, #tpu.memory_space<semaphore_mem>> -> memref<!tpu.dma_semaphore, #tpu.memory_space<semaphore_mem>>
      tpu.enqueue_dma source(%74 : memref<2x4x1x128xf32, #tpu.memory_space<vmem>>) target(%75 : memref<2x4x1x128xf32, #tpu.memory_space<any>>) target_semaphore(%77 : memref<!tpu.dma_semaphore, #tpu.memory_space<semaphore_mem>>)
    } else {
    }
    %c0_i32_31 = arith.constant 0 : i32
    %49 = arith.addi %0, %c0_i32_31 : i32
    %c8_i32_32 = arith.constant 8 : i32
    %50 = arith.cmpi slt, %49, %c8_i32_32 : i32
    %51 = arith.extui %50 : i1 to i32
    %c0_i32_33 = arith.constant 0 : i32
    %52 = arith.cmpi ne, %51, %c0_i32_33 : i32
    scf.if %52 {
      %c0_i32_43 = arith.constant 0 : i32
      %65 = arith.addi %0, %c0_i32_43 : i32
      %66 = arith.index_cast %65 : i32 to index
      %67 = memref.load %arg1[%66] : memref<8xi32, #tpu.memory_space<smem>>
      %c0_i32_44 = arith.constant 0 : i32
      %c0_i32_45 = arith.constant 0 : i32
      %c0_i32_46 = arith.constant 0 : i32
      %c0_i32_47 = arith.constant 0 : i32
      %c0_i32_48 = arith.constant 0 : i32
      %c0_i32_49 = arith.constant 0 : i32
      %c0_i32_50 = arith.constant 0 : i32
      %68 = tpu.memref_slice %arg8[%c0_i32_44, %c0_i32_47, %c0_i32_48, %c0_i32_49, %c0_i32_50] : memref<4x2x4x1x128xf32, #tpu.memory_space<vmem>> -> memref<1x2x4x1x128xf32, #tpu.memory_space<vmem>>
      %69 = tpu.memref_squeeze %68 : memref<1x2x4x1x128xf32, #tpu.memory_space<vmem>> -> memref<2x4x1x128xf32, #tpu.memory_space<vmem>>
      %c0_i32_51 = arith.constant 0 : i32
      %c0_i32_52 = arith.constant 0 : i32
      %c0_i32_53 = arith.constant 0 : i32
      %70 = tpu.memref_slice %arg6[%c0_i32_51, %c0_i32_52, %67, %c0_i32_53] : memref<2x4x16x128xf32, #tpu.memory_space<any>> -> memref<2x4x1x128xf32, #tpu.memory_space<any>>
      %71 = tpu.memref_slice %arg10[%c0_i32_45, %c0_i32_46] : memref<2x4x!tpu.dma_semaphore, #tpu.memory_space<semaphore_mem>> -> memref<1x1x!tpu.dma_semaphore, #tpu.memory_space<semaphore_mem>>
      %72 = tpu.memref_squeeze %71 : memref<1x1x!tpu.dma_semaphore, #tpu.memory_space<semaphore_mem>> -> memref<!tpu.dma_semaphore, #tpu.memory_space<semaphore_mem>>
      tpu.wait_dma2 semaphore(%72 : memref<!tpu.dma_semaphore, #tpu.memory_space<semaphore_mem>>) src(%69 : memref<2x4x1x128xf32, #tpu.memory_space<vmem>>) dst(%70 : memref<2x4x1x128xf32, #tpu.memory_space<any>>)
      %c0_i32_54 = arith.constant 0 : i32
      %c1_i32_55 = arith.constant 1 : i32
      %c0_i32_56 = arith.constant 0 : i32
      %c0_i32_57 = arith.constant 0 : i32
      %c0_i32_58 = arith.constant 0 : i32
      %c0_i32_59 = arith.constant 0 : i32
      %c0_i32_60 = arith.constant 0 : i32
      %73 = tpu.memref_slice %arg9[%c0_i32_54, %c0_i32_57, %c0_i32_58, %c0_i32_59, %c0_i32_60] : memref<4x2x4x1x128xf32, #tpu.memory_space<vmem>> -> memref<1x2x4x1x128xf32, #tpu.memory_space<vmem>>
      %74 = tpu.memref_squeeze %73 : memref<1x2x4x1x128xf32, #tpu.memory_space<vmem>> -> memref<2x4x1x128xf32, #tpu.memory_space<vmem>>
      %c0_i32_61 = arith.constant 0 : i32
      %c0_i32_62 = arith.constant 0 : i32
      %c0_i32_63 = arith.constant 0 : i32
      %75 = tpu.memref_slice %arg7[%c0_i32_61, %c0_i32_62, %67, %c0_i32_63] : memref<2x4x16x128xf32, #tpu.memory_space<any>> -> memref<2x4x1x128xf32, #tpu.memory_space<any>>
      %76 = tpu.memref_slice %arg10[%c1_i32_55, %c0_i32_56] : memref<2x4x!tpu.dma_semaphore, #tpu.memory_space<semaphore_mem>> -> memref<1x1x!tpu.dma_semaphore, #tpu.memory_space<semaphore_mem>>
      %77 = tpu.memref_squeeze %76 : memref<1x1x!tpu.dma_semaphore, #tpu.memory_space<semaphore_mem>> -> memref<!tpu.dma_semaphore, #tpu.memory_space<semaphore_mem>>
      tpu.wait_dma2 semaphore(%77 : memref<!tpu.dma_semaphore, #tpu.memory_space<semaphore_mem>>) src(%74 : memref<2x4x1x128xf32, #tpu.memory_space<vmem>>) dst(%75 : memref<2x4x1x128xf32, #tpu.memory_space<any>>)
    } else {
    }
    %c1_i32_34 = arith.constant 1 : i32
    %53 = arith.addi %0, %c1_i32_34 : i32
    %c8_i32_35 = arith.constant 8 : i32
    %54 = arith.cmpi slt, %53, %c8_i32_35 : i32
    %55 = arith.extui %54 : i1 to i32
    %c0_i32_36 = arith.constant 0 : i32
    %56 = arith.cmpi ne, %55, %c0_i32_36 : i32
    scf.if %56 {
      %c1_i32_43 = arith.constant 1 : i32
      %65 = arith.addi %0, %c1_i32_43 : i32
      %66 = arith.index_cast %65 : i32 to index
      %67 = memref.load %arg1[%66] : memref<8xi32, #tpu.memory_space<smem>>
      %c1_i32_44 = arith.constant 1 : i32
      %c0_i32_45 = arith.constant 0 : i32
      %c1_i32_46 = arith.constant 1 : i32
      %c0_i32_47 = arith.constant 0 : i32
      %c0_i32_48 = arith.constant 0 : i32
      %c0_i32_49 = arith.constant 0 : i32
      %c0_i32_50 = arith.constant 0 : i32
      %68 = tpu.memref_slice %arg8[%c1_i32_44, %c0_i32_47, %c0_i32_48, %c0_i32_49, %c0_i32_50] : memref<4x2x4x1x128xf32, #tpu.memory_space<vmem>> -> memref<1x2x4x1x128xf32, #tpu.memory_space<vmem>>
      %69 = tpu.memref_squeeze %68 : memref<1x2x4x1x128xf32, #tpu.memory_space<vmem>> -> memref<2x4x1x128xf32, #tpu.memory_space<vmem>>
      %c0_i32_51 = arith.constant 0 : i32
      %c0_i32_52 = arith.constant 0 : i32
      %c0_i32_53 = arith.constant 0 : i32
      %70 = tpu.memref_slice %arg6[%c0_i32_51, %c0_i32_52, %67, %c0_i32_53] : memref<2x4x16x128xf32, #tpu.memory_space<any>> -> memref<2x4x1x128xf32, #tpu.memory_space<any>>
      %71 = tpu.memref_slice %arg10[%c0_i32_45, %c1_i32_46] : memref<2x4x!tpu.dma_semaphore, #tpu.memory_space<semaphore_mem>> -> memref<1x1x!tpu.dma_semaphore, #tpu.memory_space<semaphore_mem>>
      %72 = tpu.memref_squeeze %71 : memref<1x1x!tpu.dma_semaphore, #tpu.memory_space<semaphore_mem>> -> memref<!tpu.dma_semaphore, #tpu.memory_space<semaphore_mem>>
      tpu.wait_dma2 semaphore(%72 : memref<!tpu.dma_semaphore, #tpu.memory_space<semaphore_mem>>) src(%69 : memref<2x4x1x128xf32, #tpu.memory_space<vmem>>) dst(%70 : memref<2x4x1x128xf32, #tpu.memory_space<any>>)
      %c1_i32_54 = arith.constant 1 : i32
      %c1_i32_55 = arith.constant 1 : i32
      %c1_i32_56 = arith.constant 1 : i32
      %c0_i32_57 = arith.constant 0 : i32
      %c0_i32_58 = arith.constant 0 : i32
      %c0_i32_59 = arith.constant 0 : i32
      %c0_i32_60 = arith.constant 0 : i32
      %73 = tpu.memref_slice %arg9[%c1_i32_54, %c0_i32_57, %c0_i32_58, %c0_i32_59, %c0_i32_60] : memref<4x2x4x1x128xf32, #tpu.memory_space<vmem>> -> memref<1x2x4x1x128xf32, #tpu.memory_space<vmem>>
      %74 = tpu.memref_squeeze %73 : memref<1x2x4x1x128xf32, #tpu.memory_space<vmem>> -> memref<2x4x1x128xf32, #tpu.memory_space<vmem>>
      %c0_i32_61 = arith.constant 0 : i32
      %c0_i32_62 = arith.constant 0 : i32
      %c0_i32_63 = arith.constant 0 : i32
      %75 = tpu.memref_slice %arg7[%c0_i32_61, %c0_i32_62, %67, %c0_i32_63] : memref<2x4x16x128xf32, #tpu.memory_space<any>> -> memref<2x4x1x128xf32, #tpu.memory_space<any>>
      %76 = tpu.memref_slice %arg10[%c1_i32_55, %c1_i32_56] : memref<2x4x!tpu.dma_semaphore, #tpu.memory_space<semaphore_mem>> -> memref<1x1x!tpu.dma_semaphore, #tpu.memory_space<semaphore_mem>>
      %77 = tpu.memref_squeeze %76 : memref<1x1x!tpu.dma_semaphore, #tpu.memory_space<semaphore_mem>> -> memref<!tpu.dma_semaphore, #tpu.memory_space<semaphore_mem>>
      tpu.wait_dma2 semaphore(%77 : memref<!tpu.dma_semaphore, #tpu.memory_space<semaphore_mem>>) src(%74 : memref<2x4x1x128xf32, #tpu.memory_space<vmem>>) dst(%75 : memref<2x4x1x128xf32, #tpu.memory_space<any>>)
    } else {
    }
    %c2_i32_37 = arith.constant 2 : i32
    %57 = arith.addi %0, %c2_i32_37 : i32
    %c8_i32_38 = arith.constant 8 : i32
    %58 = arith.cmpi slt, %57, %c8_i32_38 : i32
    %59 = arith.extui %58 : i1 to i32
    %c0_i32_39 = arith.constant 0 : i32
    %60 = arith.cmpi ne, %59, %c0_i32_39 : i32
    scf.if %60 {
      %c2_i32_43 = arith.constant 2 : i32
      %65 = arith.addi %0, %c2_i32_43 : i32
      %66 = arith.index_cast %65 : i32 to index
      %67 = memref.load %arg1[%66] : memref<8xi32, #tpu.memory_space<smem>>
      %c2_i32_44 = arith.constant 2 : i32
      %c0_i32_45 = arith.constant 0 : i32
      %c2_i32_46 = arith.constant 2 : i32
      %c0_i32_47 = arith.constant 0 : i32
      %c0_i32_48 = arith.constant 0 : i32
      %c0_i32_49 = arith.constant 0 : i32
      %c0_i32_50 = arith.constant 0 : i32
      %68 = tpu.memref_slice %arg8[%c2_i32_44, %c0_i32_47, %c0_i32_48, %c0_i32_49, %c0_i32_50] : memref<4x2x4x1x128xf32, #tpu.memory_space<vmem>> -> memref<1x2x4x1x128xf32, #tpu.memory_space<vmem>>
      %69 = tpu.memref_squeeze %68 : memref<1x2x4x1x128xf32, #tpu.memory_space<vmem>> -> memref<2x4x1x128xf32, #tpu.memory_space<vmem>>
      %c0_i32_51 = arith.constant 0 : i32
      %c0_i32_52 = arith.constant 0 : i32
      %c0_i32_53 = arith.constant 0 : i32
      %70 = tpu.memref_slice %arg6[%c0_i32_51, %c0_i32_52, %67, %c0_i32_53] : memref<2x4x16x128xf32, #tpu.memory_space<any>> -> memref<2x4x1x128xf32, #tpu.memory_space<any>>
      %71 = tpu.memref_slice %arg10[%c0_i32_45, %c2_i32_46] : memref<2x4x!tpu.dma_semaphore, #tpu.memory_space<semaphore_mem>> -> memref<1x1x!tpu.dma_semaphore, #tpu.memory_space<semaphore_mem>>
      %72 = tpu.memref_squeeze %71 : memref<1x1x!tpu.dma_semaphore, #tpu.memory_space<semaphore_mem>> -> memref<!tpu.dma_semaphore, #tpu.memory_space<semaphore_mem>>
      tpu.wait_dma2 semaphore(%72 : memref<!tpu.dma_semaphore, #tpu.memory_space<semaphore_mem>>) src(%69 : memref<2x4x1x128xf32, #tpu.memory_space<vmem>>) dst(%70 : memref<2x4x1x128xf32, #tpu.memory_space<any>>)
      %c2_i32_54 = arith.constant 2 : i32
      %c1_i32_55 = arith.constant 1 : i32
      %c2_i32_56 = arith.constant 2 : i32
      %c0_i32_57 = arith.constant 0 : i32
      %c0_i32_58 = arith.constant 0 : i32
      %c0_i32_59 = arith.constant 0 : i32
      %c0_i32_60 = arith.constant 0 : i32
      %73 = tpu.memref_slice %arg9[%c2_i32_54, %c0_i32_57, %c0_i32_58, %c0_i32_59, %c0_i32_60] : memref<4x2x4x1x128xf32, #tpu.memory_space<vmem>> -> memref<1x2x4x1x128xf32, #tpu.memory_space<vmem>>
      %74 = tpu.memref_squeeze %73 : memref<1x2x4x1x128xf32, #tpu.memory_space<vmem>> -> memref<2x4x1x128xf32, #tpu.memory_space<vmem>>
      %c0_i32_61 = arith.constant 0 : i32
      %c0_i32_62 = arith.constant 0 : i32
      %c0_i32_63 = arith.constant 0 : i32
      %75 = tpu.memref_slice %arg7[%c0_i32_61, %c0_i32_62, %67, %c0_i32_63] : memref<2x4x16x128xf32, #tpu.memory_space<any>> -> memref<2x4x1x128xf32, #tpu.memory_space<any>>
      %76 = tpu.memref_slice %arg10[%c1_i32_55, %c2_i32_56] : memref<2x4x!tpu.dma_semaphore, #tpu.memory_space<semaphore_mem>> -> memref<1x1x!tpu.dma_semaphore, #tpu.memory_space<semaphore_mem>>
      %77 = tpu.memref_squeeze %76 : memref<1x1x!tpu.dma_semaphore, #tpu.memory_space<semaphore_mem>> -> memref<!tpu.dma_semaphore, #tpu.memory_space<semaphore_mem>>
      tpu.wait_dma2 semaphore(%77 : memref<!tpu.dma_semaphore, #tpu.memory_space<semaphore_mem>>) src(%74 : memref<2x4x1x128xf32, #tpu.memory_space<vmem>>) dst(%75 : memref<2x4x1x128xf32, #tpu.memory_space<any>>)
    } else {
    }
    %c3_i32_40 = arith.constant 3 : i32
    %61 = arith.addi %0, %c3_i32_40 : i32
    %c8_i32_41 = arith.constant 8 : i32
    %62 = arith.cmpi slt, %61, %c8_i32_41 : i32
    %63 = arith.extui %62 : i1 to i32
    %c0_i32_42 = arith.constant 0 : i32
    %64 = arith.cmpi ne, %63, %c0_i32_42 : i32
    scf.if %64 {
      %c3_i32_43 = arith.constant 3 : i32
      %65 = arith.addi %0, %c3_i32_43 : i32
      %66 = arith.index_cast %65 : i32 to index
      %67 = memref.load %arg1[%66] : memref<8xi32, #tpu.memory_space<smem>>
      %c3_i32_44 = arith.constant 3 : i32
      %c0_i32_45 = arith.constant 0 : i32
      %c3_i32_46 = arith.constant 3 : i32
      %c0_i32_47 = arith.constant 0 : i32
      %c0_i32_48 = arith.constant 0 : i32
      %c0_i32_49 = arith.constant 0 : i32
      %c0_i32_50 = arith.constant 0 : i32
      %68 = tpu.memref_slice %arg8[%c3_i32_44, %c0_i32_47, %c0_i32_48, %c0_i32_49, %c0_i32_50] : memref<4x2x4x1x128xf32, #tpu.memory_space<vmem>> -> memref<1x2x4x1x128xf32, #tpu.memory_space<vmem>>
      %69 = tpu.memref_squeeze %68 : memref<1x2x4x1x128xf32, #tpu.memory_space<vmem>> -> memref<2x4x1x128xf32, #tpu.memory_space<vmem>>
      %c0_i32_51 = arith.constant 0 : i32
      %c0_i32_52 = arith.constant 0 : i32
      %c0_i32_53 = arith.constant 0 : i32
      %70 = tpu.memref_slice %arg6[%c0_i32_51, %c0_i32_52, %67, %c0_i32_53] : memref<2x4x16x128xf32, #tpu.memory_space<any>> -> memref<2x4x1x128xf32, #tpu.memory_space<any>>
      %71 = tpu.memref_slice %arg10[%c0_i32_45, %c3_i32_46] : memref<2x4x!tpu.dma_semaphore, #tpu.memory_space<semaphore_mem>> -> memref<1x1x!tpu.dma_semaphore, #tpu.memory_space<semaphore_mem>>
      %72 = tpu.memref_squeeze %71 : memref<1x1x!tpu.dma_semaphore, #tpu.memory_space<semaphore_mem>> -> memref<!tpu.dma_semaphore, #tpu.memory_space<semaphore_mem>>
      tpu.wait_dma2 semaphore(%72 : memref<!tpu.dma_semaphore, #tpu.memory_space<semaphore_mem>>) src(%69 : memref<2x4x1x128xf32, #tpu.memory_space<vmem>>) dst(%70 : memref<2x4x1x128xf32, #tpu.memory_space<any>>)
      %c3_i32_54 = arith.constant 3 : i32
      %c1_i32_55 = arith.constant 1 : i32
      %c3_i32_56 = arith.constant 3 : i32
      %c0_i32_57 = arith.constant 0 : i32
      %c0_i32_58 = arith.constant 0 : i32
      %c0_i32_59 = arith.constant 0 : i32
      %c0_i32_60 = arith.constant 0 : i32
      %73 = tpu.memref_slice %arg9[%c3_i32_54, %c0_i32_57, %c0_i32_58, %c0_i32_59, %c0_i32_60] : memref<4x2x4x1x128xf32, #tpu.memory_space<vmem>> -> memref<1x2x4x1x128xf32, #tpu.memory_space<vmem>>
      %74 = tpu.memref_squeeze %73 : memref<1x2x4x1x128xf32, #tpu.memory_space<vmem>> -> memref<2x4x1x128xf32, #tpu.memory_space<vmem>>
      %c0_i32_61 = arith.constant 0 : i32
      %c0_i32_62 = arith.constant 0 : i32
      %c0_i32_63 = arith.constant 0 : i32
      %75 = tpu.memref_slice %arg7[%c0_i32_61, %c0_i32_62, %67, %c0_i32_63] : memref<2x4x16x128xf32, #tpu.memory_space<any>> -> memref<2x4x1x128xf32, #tpu.memory_space<any>>
      %76 = tpu.memref_slice %arg10[%c1_i32_55, %c3_i32_56] : memref<2x4x!tpu.dma_semaphore, #tpu.memory_space<semaphore_mem>> -> memref<1x1x!tpu.dma_semaphore, #tpu.memory_space<semaphore_mem>>
      %77 = tpu.memref_squeeze %76 : memref<1x1x!tpu.dma_semaphore, #tpu.memory_space<semaphore_mem>> -> memref<!tpu.dma_semaphore, #tpu.memory_space<semaphore_mem>>
      tpu.wait_dma2 semaphore(%77 : memref<!tpu.dma_semaphore, #tpu.memory_space<semaphore_mem>>) src(%74 : memref<2x4x1x128xf32, #tpu.memory_space<vmem>>) dst(%75 : memref<2x4x1x128xf32, #tpu.memory_space<any>>)
    } else {
    }
    return
  }
}

</mosaic_0001>

<bundles_post_ra>
// kernel: tpu_custom_call.1
= control target key start
LH: loop header
LB: loop body
LE: loop exit
PB: predicated region body
PF: predicated region fallthrough
CT: control target
= control target key end

     0   :  { %s2078_s0 = inlined_call_operand.vmem [shape: s32[8], index: 0, kind: input, shape index: {}]   ;;  %s2079_s1 = inlined_call_operand.vmem [shape: f32[2,4,8,128], index: 1, kind: input, shape index: {}]   ;;  %s2080_s2 = inlined_call_operand.vmem [shape: f32[2,4,8,128], index: 2, kind: input, shape index: {}]   ;;  %s2081_s3 = inlined_call_operand.hbm [shape: f32[2,4,16,128], index: 3, kind: input, shape index: {}, may-alias: {3,5}]   ;;  %s2082_s4 = inlined_call_operand.hbm [shape: f32[2,4,16,128], index: 4, kind: input, shape index: {}, may-alias: {4,6}]   ;;  %s2083_s5 = inlined_call_operand.hbm [shape: f32[2,4,16,128], index: 5, kind: output, shape index: {0}, may-alias: {3,5}]   ;;  %s2084_s6 = inlined_call_operand.hbm [shape: f32[2,4,16,128], index: 6, kind: output, shape index: {1}, may-alias: {4,6}]  }
   0x1   :  { %2095 = sst [smem:[#allocation44_spill]] %s2079_s1  ;;  %s12_s23 = sshll.u32 %s2078_s0, 4  ;;  %s13_s23 = int_to_ptr.vmem [resolvable:$true] %s12_s23 }
   0x2   :  { %2096 = sst [smem:[#allocation45_spill]] %s2080_s2  ;;  %s1322_s24 = scalar_lea.vmem %s13_s23, 16 }
   0x3   :  { %p1323_p0 = scmp.ne.s32.totalorder %s13_s23, %s1322_s24  ;;  %p1327_p1 = scmp.lt.s32.totalorder %s13_s23, %s13_s23 }
   0x4   :  { %p1328_p2 = scmp.lt.s32.totalorder %s1322_s24, %s1322_s24 }
   0x6   :  { %p1329_p3 = por %p1328_p2, %p1327_p1 }
   0x8   :  { %p1330_p4 = pnand %p1329_p3, %p1323_p0 }
   0xa   :  { %1333 = shalt.err (!%p1330_p4)  }
   0xb   :  { %s1632_s3 = smov [#allocation6]  }
   0xc   :  { %15 = dma.vmem_to_smem %s13_s23, 16, %s1632_s3, [#allocation5] }
   0xd   :  { %1562 = dma.done.wait [#allocation5], 16 }
   0xe   :  { %1563 = vsyncadd [#allocation5], 4294967280 }
   0xf   :  { %17 = sfence }
  0x10   :  { %s1682_s4 = smov 0  }
  0x11 LB: > { %s1688_s0 = sshll.u32 %s1630_s4, 2  ;;  %s1630_s4 = sphi %s1682_s4, %s23_s4  }
  0x12   : > { %p1112_p5 = scmp.ge.s32.totalorder %s1688_s0, 8 }
  0x13   : > { %s2097_s1 = sld [smem:[#allocation44_spill]] (!%p1112_p5) }
  0x14   : > { %29 = sbr.rel (%p1112_p5) target bundleno = 46 (0x2e), region = 12 }
  0x19   : > { %s30_s27 = scalar_lea.vmem (!%p1112_p5), %s2097_s1, %s1688_s0 }
  0x1a   : > { %v48_v0 = vld [vmem:[%s30_s27] sm:$0x1] (!%p1112_p5)  ;;  %v50_v1 = vld [vmem:[%s30_s27 + $0x8] sm:$0x1] (!%p1112_p5)  ;;  %v52_v2 = vld [vmem:[%s30_s27 + $0x10] sm:$0x1] (!%p1112_p5) }
  0x1b   : > { %49 = vst [vmem:[#allocation2] sm:$0x1] %v48_v0  ;;  %51 = vst [vmem:[#allocation2 + $0x1] sm:$0x1] %v50_v1  ;;  %v54_v3 = vld [vmem:[%s30_s27 + $0x18] sm:$0x1] }
  0x1c   : > { %53 = vst [vmem:[#allocation2 + $0x2] sm:$0x1] %v52_v2  ;;  %v56_v4 = vld [vmem:[%s30_s27 + $0x20] sm:$0x1]  ;;  %v58_v5 = vld [vmem:[%s30_s27 + $0x28] sm:$0x1] }
  0x1d   : > { %55 = vst [vmem:[#allocation2 + $0x3] sm:$0x1] %v54_v3  ;;  %57 = vst [vmem:[#allocation2 + $0x4] sm:$0x1] %v56_v4  ;;  %v60_v6 = vld [vmem:[%s30_s27 + $0x30] sm:$0x1] }
  0x1e   : > { %59 = vst [vmem:[#allocation2 + $0x5] sm:$0x1] %v58_v5  ;;  %v62_v7 = vld [vmem:[%s30_s27 + $0x38] sm:$0x1]  ;;  %61 = vst [vmem:[#allocation2 + $0x6] sm:$0x1] %v60_v6 }
  0x1f   : > { %63 = vst [vmem:[#allocation2 + $0x7] sm:$0x1] %v62_v7 }
  0x20   : > { %110 = vsyncadd [#allocation4], 128  ;;  %s2098_s2 = sld [smem:[#allocation45_spill]] }
  0x26   : > { %s111_s30 = scalar_lea.vmem %s2098_s2, %s1688_s0 }
  0x27   : > { %v130_v8 = vld [vmem:[%s111_s30] sm:$0x1]  ;;  %v132_v9 = vld [vmem:[%s111_s30 + $0x8] sm:$0x1]  ;;  %v134_v10 = vld [vmem:[%s111_s30 + $0x10] sm:$0x1] }
  0x28   : > { %131 = vst [vmem:[#allocation3] sm:$0x1] %v130_v8  ;;  %133 = vst [vmem:[#allocation3 + $0x1] sm:$0x1] %v132_v9  ;;  %v136_v11 = vld [vmem:[%s111_s30 + $0x18] sm:$0x1] }
  0x29   : > { %135 = vst [vmem:[#allocation3 + $0x2] sm:$0x1] %v134_v10  ;;  %v138_v12 = vld [vmem:[%s111_s30 + $0x20] sm:$0x1]  ;;  %v140_v13 = vld [vmem:[%s111_s30 + $0x28] sm:$0x1] }
  0x2a   : > { %137 = vst [vmem:[#allocation3 + $0x3] sm:$0x1] %v136_v11  ;;  %139 = vst [vmem:[#allocation3 + $0x4] sm:$0x1] %v138_v12  ;;  %v142_v14 = vld [vmem:[%s111_s30 + $0x30] sm:$0x1] }
  0x2b   : > { %141 = vst [vmem:[#allocation3 + $0x5] sm:$0x1] %v140_v13  ;;  %v144_v15 = vld [vmem:[%s111_s30 + $0x38] sm:$0x1]  ;;  %143 = vst [vmem:[#allocation3 + $0x6] sm:$0x1] %v142_v14 }
  0x2c   : > { %145 = vst [vmem:[#allocation3 + $0x7] sm:$0x1] %v144_v15 }
  0x2d   : > { %192 = vsyncadd [#allocation4 + $0x4], 128 }
  0x2e PF: > { %s1700_s7 = sadd.s32 1, %s1688_s0 }
  0x2f   : > { %p1113_p6 = scmp.ge.s32.totalorder %s1700_s7, 8 }
  0x30   : > { %s2099_s1 = sld [smem:[#allocation44_spill]] (!%p1113_p6) }
  0x31   : > { %197 = sbr.rel (%p1113_p6) target bundleno = 75 (0x4b), region = 90 }
  0x36   : > { %s953_s10 = scalar_lea.vmem (!%p1113_p6), %s2099_s1, %s1688_s0 }
  0x37   : > { %v1123_v16 = vld [vmem:[%s953_s10 + $0x1] sm:$0x1] (!%p1113_p6)  ;;  %v1124_v17 = vld [vmem:[%s953_s10 + $0x9] sm:$0x1] (!%p1113_p6)  ;;  %v1125_v18 = vld [vmem:[%s953_s10 + $0x11] sm:$0x1] (!%p1113_p6) }
  0x38   : > { %219 = vst [vmem:[#allocation2 + $0x8] sm:$0x1] %v1123_v16  ;;  %221 = vst [vmem:[#allocation2 + $0x9] sm:$0x1] %v1124_v17  ;;  %v1126_v19 = vld [vmem:[%s953_s10 + $0x19] sm:$0x1] }
  0x39   : > { %223 = vst [vmem:[#allocation2 + $0xa] sm:$0x1] %v1125_v18  ;;  %v1127_v20 = vld [vmem:[%s953_s10 + $0x21] sm:$0x1]  ;;  %v1128_v21 = vld [vmem:[%s953_s10 + $0x29] sm:$0x1] }
  0x3a   : > { %225 = vst [vmem:[#allocation2 + $0xb] sm:$0x1] %v1126_v19  ;;  %227 = vst [vmem:[#allocation2 + $0xc] sm:$0x1] %v1127_v20  ;;  %v1129_v22 = vld [vmem:[%s953_s10 + $0x31] sm:$0x1] }
  0x3b   : > { %229 = vst [vmem:[#allocation2 + $0xd] sm:$0x1] %v1128_v21  ;;  %v1130_v23 = vld [vmem:[%s953_s10 + $0x39] sm:$0x1]  ;;  %231 = vst [vmem:[#allocation2 + $0xe] sm:$0x1] %v1129_v22 }
  0x3c   : > { %233 = vst [vmem:[#allocation2 + $0xf] sm:$0x1] %v1130_v23 }
  0x3d   : > { %280 = vsyncadd [#allocation4 + $0x1], 128  ;;  %s2100_s2 = sld [smem:[#allocation45_spill]] }
  0x43   : > { %s960_s13 = scalar_lea.vmem %s2100_s2, %s1688_s0 }
  0x44   : > { %v1140_v24 = vld [vmem:[%s960_s13 + $0x1] sm:$0x1]  ;;  %v1141_v25 = vld [vmem:[%s960_s13 + $0x9] sm:$0x1]  ;;  %v1142_v26 = vld [vmem:[%s960_s13 + $0x11] sm:$0x1] }
  0x45   : > { %302 = vst [vmem:[#allocation3 + $0x8] sm:$0x1] %v1140_v24  ;;  %304 = vst [vmem:[#allocation3 + $0x9] sm:$0x1] %v1141_v25  ;;  %v1143_v27 = vld [vmem:[%s960_s13 + $0x19] sm:$0x1] }
  0x46   : > { %306 = vst [vmem:[#allocation3 + $0xa] sm:$0x1] %v1142_v26  ;;  %v1144_v28 = vld [vmem:[%s960_s13 + $0x21] sm:$0x1]  ;;  %v1145_v29 = vld [vmem:[%s960_s13 + $0x29] sm:$0x1] }
  0x47   : > { %308 = vst [vmem:[#allocation3 + $0xb] sm:$0x1] %v1143_v27  ;;  %310 = vst [vmem:[#allocation3 + $0xc] sm:$0x1] %v1144_v28  ;;  %v1146_v30 = vld [vmem:[%s960_s13 + $0x31] sm:$0x1] }
  0x48   : > { %312 = vst [vmem:[#allocation3 + $0xd] sm:$0x1] %v1145_v29  ;;  %v1147_v31 = vld [vmem:[%s960_s13 + $0x39] sm:$0x1]  ;;  %314 = vst [vmem:[#allocation3 + $0xe] sm:$0x1] %v1146_v30 }
  0x49   : > { %316 = vst [vmem:[#allocation3 + $0xf] sm:$0x1] %v1147_v31 }
  0x4a   : > { %363 = vsyncadd [#allocation4 + $0x5], 128 }
  0x4b PF: > { %s1712_s14 = sadd.s32 2, %s1688_s0 }
  0x4c   : > { %p1148_p7 = scmp.ge.s32.totalorder %s1712_s14, 8 }
  0x4d   : > { %s2101_s1 = sld [smem:[#allocation44_spill]] (!%p1148_p7) }
  0x4e   : > { %368 = sbr.rel (%p1148_p7) target bundleno = 104 (0x68), region = 168 }
  0x53   : > { %s967_s17 = scalar_lea.vmem (!%p1148_p7), %s2101_s1, %s1688_s0 }
  0x54   : > { %v1158_v32 = vld [vmem:[%s967_s17 + $0x2] sm:$0x1] (!%p1148_p7)  ;;  %v1159_v33 = vld [vmem:[%s967_s17 + $0xa] sm:$0x1] (!%p1148_p7)  ;;  %v1160_v34 = vld [vmem:[%s967_s17 + $0x12] sm:$0x1] (!%p1148_p7) }
  0x55   : > { %390 = vst [vmem:[#allocation2 + $0x10] sm:$0x1] %v1158_v32  ;;  %392 = vst [vmem:[#allocation2 + $0x11] sm:$0x1] %v1159_v33  ;;  %v1161_v35 = vld [vmem:[%s967_s17 + $0x1a] sm:$0x1] }
  0x56   : > { %394 = vst [vmem:[#allocation2 + $0x12] sm:$0x1] %v1160_v34  ;;  %v1162_v36 = vld [vmem:[%s967_s17 + $0x22] sm:$0x1]  ;;  %v1163_v37 = vld [vmem:[%s967_s17 + $0x2a] sm:$0x1] }
  0x57   : > { %396 = vst [vmem:[#allocation2 + $0x13] sm:$0x1] %v1161_v35  ;;  %398 = vst [vmem:[#allocation2 + $0x14] sm:$0x1] %v1162_v36  ;;  %v1164_v38 = vld [vmem:[%s967_s17 + $0x32] sm:$0x1] }
  0x58   : > { %400 = vst [vmem:[#allocation2 + $0x15] sm:$0x1] %v1163_v37  ;;  %v1165_v39 = vld [vmem:[%s967_s17 + $0x3a] sm:$0x1]  ;;  %402 = vst [vmem:[#allocation2 + $0x16] sm:$0x1] %v1164_v38 }
  0x59   : > { %404 = vst [vmem:[#allocation2 + $0x17] sm:$0x1] %v1165_v39 }
  0x5a   : > { %451 = vsyncadd [#allocation4 + $0x2], 128  ;;  %s2102_s2 = sld [smem:[#allocation45_spill]] }
  0x60   : > { %s974_s20 = scalar_lea.vmem %s2102_s2, %s1688_s0 }
  0x61   : > { %v1175_v40 = vld [vmem:[%s974_s20 + $0x2] sm:$0x1]  ;;  %v1176_v41 = vld [vmem:[%s974_s20 + $0xa] sm:$0x1]  ;;  %v1177_v42 = vld [vmem:[%s974_s20 + $0x12] sm:$0x1] }
  0x62   : > { %473 = vst [vmem:[#allocation3 + $0x10] sm:$0x1] %v1175_v40  ;;  %475 = vst [vmem:[#allocation3 + $0x11] sm:$0x1] %v1176_v41  ;;  %v1178_v43 = vld [vmem:[%s974_s20 + $0x1a] sm:$0x1] }
  0x63   : > { %477 = vst [vmem:[#allocation3 + $0x12] sm:$0x1] %v1177_v42  ;;  %v1179_v44 = vld [vmem:[%s974_s20 + $0x22] sm:$0x1]  ;;  %v1180_v45 = vld [vmem:[%s974_s20 + $0x2a] sm:$0x1] }
  0x64   : > { %479 = vst [vmem:[#allocation3 + $0x13] sm:$0x1] %v1178_v43  ;;  %481 = vst [vmem:[#allocation3 + $0x14] sm:$0x1] %v1179_v44  ;;  %v1181_v46 = vld [vmem:[%s974_s20 + $0x32] sm:$0x1] }
  0x65   : > { %483 = vst [vmem:[#allocation3 + $0x15] sm:$0x1] %v1180_v45  ;;  %v1182_v47 = vld [vmem:[%s974_s20 + $0x3a] sm:$0x1]  ;;  %485 = vst [vmem:[#allocation3 + $0x16] sm:$0x1] %v1181_v46 }
  0x66   : > { %487 = vst [vmem:[#allocation3 + $0x17] sm:$0x1] %v1182_v47 }
  0x67   : > { %534 = vsyncadd [#allocation4 + $0x6], 128 }
  0x68 PF: > { %s1724_s21 = sadd.s32 3, %s1688_s0 }
  0x69   : > { %p1183_p8 = scmp.ge.s32.totalorder %s1724_s21, 8 }
  0x6a   : > { %s2103_s1 = sld [smem:[#allocation44_spill]] (!%p1183_p8) }
  0x6b   : > { %539 = sbr.rel (%p1183_p8) target bundleno = 133 (0x85), region = 246 }
  0x70   : > { %s981_s24 = scalar_lea.vmem (!%p1183_p8), %s2103_s1, %s1688_s0 }
  0x71   : > { %v1193_v48 = vld [vmem:[%s981_s24 + $0x3] sm:$0x1] (!%p1183_p8)  ;;  %v1194_v49 = vld [vmem:[%s981_s24 + $0xb] sm:$0x1] (!%p1183_p8)  ;;  %v1195_v50 = vld [vmem:[%s981_s24 + $0x13] sm:$0x1] (!%p1183_p8) }
  0x72   : > { %561 = vst [vmem:[#allocation2 + $0x18] sm:$0x1] %v1193_v48  ;;  %563 = vst [vmem:[#allocation2 + $0x19] sm:$0x1] %v1194_v49  ;;  %v1196_v51 = vld [vmem:[%s981_s24 + $0x1b] sm:$0x1] }
  0x73   : > { %565 = vst [vmem:[#allocation2 + $0x1a] sm:$0x1] %v1195_v50  ;;  %v1197_v52 = vld [vmem:[%s981_s24 + $0x23] sm:$0x1]  ;;  %v1198_v53 = vld [vmem:[%s981_s24 + $0x2b] sm:$0x1] }
  0x74   : > { %567 = vst [vmem:[#allocation2 + $0x1b] sm:$0x1] %v1196_v51  ;;  %569 = vst [vmem:[#allocation2 + $0x1c] sm:$0x1] %v1197_v52  ;;  %v1199_v54 = vld [vmem:[%s981_s24 + $0x33] sm:$0x1] }
  0x75   : > { %571 = vst [vmem:[#allocation2 + $0x1d] sm:$0x1] %v1198_v53  ;;  %v1200_v55 = vld [vmem:[%s981_s24 + $0x3b] sm:$0x1]  ;;  %573 = vst [vmem:[#allocation2 + $0x1e] sm:$0x1] %v1199_v54 }
  0x76   : > { %575 = vst [vmem:[#allocation2 + $0x1f] sm:$0x1] %v1200_v55 }
  0x77   : > { %622 = vsyncadd [#allocation4 + $0x3], 128  ;;  %s2104_s2 = sld [smem:[#allocation45_spill]] }
  0x7d   : > { %s988_s26 = scalar_lea.vmem %s2104_s2, %s1688_s0 }
  0x7e   : > { %v1210_v56 = vld [vmem:[%s988_s26 + $0x3] sm:$0x1]  ;;  %v1211_v57 = vld [vmem:[%s988_s26 + $0xb] sm:$0x1]  ;;  %v1212_v58 = vld [vmem:[%s988_s26 + $0x13] sm:$0x1] }
  0x7f   : > { %644 = vst [vmem:[#allocation3 + $0x18] sm:$0x1] %v1210_v56  ;;  %646 = vst [vmem:[#allocation3 + $0x19] sm:$0x1] %v1211_v57  ;;  %v1213_v59 = vld [vmem:[%s988_s26 + $0x1b] sm:$0x1] }
  0x80   : > { %648 = vst [vmem:[#allocation3 + $0x1a] sm:$0x1] %v1212_v58  ;;  %v1214_v60 = vld [vmem:[%s988_s26 + $0x23] sm:$0x1]  ;;  %v1215_v61 = vld [vmem:[%s988_s26 + $0x2b] sm:$0x1] }
  0x81   : > { %650 = vst [vmem:[#allocation3 + $0x1b] sm:$0x1] %v1213_v59  ;;  %652 = vst [vmem:[#allocation3 + $0x1c] sm:$0x1] %v1214_v60  ;;  %v1216_v62 = vld [vmem:[%s988_s26 + $0x33] sm:$0x1] }
  0x82   : > { %654 = vst [vmem:[#allocation3 + $0x1d] sm:$0x1] %v1215_v61  ;;  %v1217_v63 = vld [vmem:[%s988_s26 + $0x3b] sm:$0x1]  ;;  %656 = vst [vmem:[#allocation3 + $0x1e] sm:$0x1] %v1216_v62 }
  0x83   : > { %658 = vst [vmem:[#allocation3 + $0x1f] sm:$0x1] %v1217_v63 }
  0x84   : > { %705 = vsyncadd [#allocation4 + $0x7], 128 }
  0x85 PF: > { %p2091_p9 = scmp.lt.s32.totalorder %s1688_s0, 8 }
  0x87   : > { %1565 = dma.done.wait (%p2091_p9), [#allocation4], 128 }
  0x88   : > { %1567 = vsyncadd (%p2091_p9), [#allocation4], 4294967168 }
  0x89   : > { %1569 = dma.done.wait (%p2091_p9), [#allocation4 + $0x4], 128 }
  0x8a   : > { %1571 = vsyncadd (%p2091_p9), [#allocation4 + $0x4], 4294967168  ;;  %p2094_p10 = scmp.lt.s32.totalorder %s1700_s7, 8 }
  0x8c   : > { %1573 = dma.done.wait (%p2094_p10), [#allocation4 + $0x1], 128 }
  0x8d   : > { %1575 = vsyncadd (%p2094_p10), [#allocation4 + $0x1], 4294967168 }
  0x8e   : > { %1577 = dma.done.wait (%p2094_p10), [#allocation4 + $0x5], 128 }
  0x8f   : > { %1579 = vsyncadd (%p2094_p10), [#allocation4 + $0x5], 4294967168  ;;  %p2092_p11 = scmp.lt.s32.totalorder %s1712_s14, 8 }
  0x91   : > { %1581 = dma.done.wait (%p2092_p11), [#allocation4 + $0x2], 128 }
  0x92   : > { %1583 = vsyncadd (%p2092_p11), [#allocation4 + $0x2], 4294967168 }
  0x93   : > { %1585 = dma.done.wait (%p2092_p11), [#allocation4 + $0x6], 128 }
  0x94   : > { %1587 = vsyncadd (%p2092_p11), [#allocation4 + $0x6], 4294967168  ;;  %p2093_p12 = scmp.lt.s32.totalorder %s1724_s21, 8 }
  0x96   : > { %1589 = dma.done.wait (%p2093_p12), [#allocation4 + $0x3], 128 }
  0x97   : > { %1591 = vsyncadd (%p2093_p12), [#allocation4 + $0x3], 4294967168 }
  0x98   : > { %1593 = dma.done.wait (%p2093_p12), [#allocation4 + $0x7], 128 }
  0x99   : > { %1595 = vsyncadd (%p2093_p12), [#allocation4 + $0x7], 4294967168  ;;  %s1633_s30 = smov [#allocation2]   ;;  %s1634_s9 = smov [#allocation3]  }
  0x9a   : > { %s1259_s27 = scalar_select %p2091_p9, [#allocation6], [#allocation23] }
  0x9b   : > { %s1260_s28 = scalar_select %p2091_p9, %s1688_s0, 0 }
  0x9c   : > { %s760_s8 = sshll.u32 %s1633_s30, 4  ;;  %s768_s10 = sshll.u32 %s1634_s9, 4  ;;  %s1776_s8 = int_to_ptr.vmem [resolvable:$true] %s760_s8  ;;  %s1778_s10 = int_to_ptr.vmem [resolvable:$true] %s768_s10 }
  0x9d   : > { %s756_s29 = sld [smem:[%s1259_s27 + %s1260_s28]]  ;;  %s1635_s13 = smov [#allocation2 + $0x8]  }
  0x9e   : > { %s1782_s11 = scalar_select %p2094_p10, [#allocation6], [#allocation24] }
  0x9f   : > { %s1784_s15 = sshll.u32 %s1635_s13, 4  ;;  %s1334_s23 = scalar_lea.vmem %s1776_s8, 128  ;;  %s1865_s15 = int_to_ptr.vmem [resolvable:$true] %s1784_s15 }
  0xa0   : > { %p1335_p13 = scmp.ne.s32.totalorder %s1776_s8, %s1334_s23  ;;  %s1801_s24 = scalar_lea.vmem %s1776_s8, 512 }
  0xa1   : > { %p1341_p2 = scmp.lt.s32.totalorder %s1776_s8, %s1776_s8  ;;  %p1342_p3 = scmp.lt.s32.totalorder %s1801_s24, %s1334_s23 }
  0xa2   : > { %p1336_p0 = pnand %p1335_p13, %p2091_p9 }
  0xa3   : > { %s1223_s12 = sshll.u32 %s756_s29, 4  ;;  %p1343_p4 = por %p1342_p3, %p1341_p2 }
  0xa4   : > { %s1789_s18 = scalar_lea.hbm %s2083_s5, %s1223_s12  ;;  %s1794_s22 = scalar_lea.hbm %s2084_s6, %s1223_s12 }
  0xa5   : > { %p1337_p1 = pneg %p1336_p0 }
  0xa7   : > { %p1344_p5 = pnand %p1343_p4, %p1337_p1 }
  0xa9   : > { %1347 = shalt.err (!%p1344_p5)  }
  0xaa   : > { %s1348_s3 = scalar_lea.hbm %s1789_s18, 128  ;;  %s1813_s27 = scalar_lea.hbm %s2083_s5, 2048 }
  0xab   : > { %p1349_p6 = scmp.ne.s32.totalorder %s1789_s18, %s1348_s3  ;;  %p1353_p13 = scmp.lt.u32.totalorder %s1789_s18, %s2083_s5 }
  0xac   : > { %p1354_p0 = scmp.lt.u32.totalorder %s1813_s27, %s1348_s3  ;;  %p1356_p2 = scmp.lt.u32.totalorder %s1348_s3, %s1789_s18 }
  0xad   : > { %p1350_p7 = pnand %p1349_p6, %p2091_p9 }
  0xae   : > { %p1355_p1 = por %p1354_p0, %p1353_p13 }
  0xaf   : > { %p1351_p8 = pneg %p1350_p7 }
  0xb0   : > { %p1357_p3 = por %p1356_p2, %p1355_p1 }
  0xb2   : > { %p1358_p4 = pnand %p1357_p3, %p1351_p8 }
  0xb4   : > { %1361 = shalt.err (!%p1358_p4)  }
  0xb5   : > { %s2085_s30 = smov 16   ;;  %s2087_s9 = smov 256  }
  0xb6   : > { %s2089_s12 = smov 1   ;;  %s1362_s13 = scalar_lea.vmem %s1778_s10, 128 }
  0xb7   : > { %1261 = dma.vmem_to_hbm [thread:$0]  (%p2091_p9), %s1776_s8, 128, %s1789_s18, [#allocation4], %s2085_s30, %s2087_s9, %s2089_s12 }
  0xb8   : > { %p1363_p5 = scmp.ne.s32.totalorder %s1778_s10, %s1362_s13  ;;  %s1833_s16 = scalar_lea.vmem %s1778_s10, 512 }
  0xb9   : > { %p1369_p8 = scmp.lt.s32.totalorder %s1778_s10, %s1778_s10  ;;  %p1370_p13 = scmp.lt.s32.totalorder %s1833_s16, %s1362_s13 }
  0xba   : > { %p1364_p6 = pnand %p1363_p5, %p2091_p9 }
  0xbb   : > { %p1371_p0 = por %p1370_p13, %p1369_p8 }
  0xbc   : > { %p1365_p7 = pneg %p1364_p6 }
  0xbe   : > { %p1372_p1 = pnand %p1371_p0, %p1365_p7 }
  0xc0   : > { %1375 = shalt.err (!%p1372_p1)  }
  0xc1   : > { %s1376_s17 = scalar_lea.hbm %s1794_s22, 128  ;;  %s1845_s20 = scalar_lea.hbm %s2084_s6, 2048 }
  0xc2   : > { %p1377_p2 = scmp.ne.s32.totalorder %s1794_s22, %s1376_s17  ;;  %p1381_p5 = scmp.lt.u32.totalorder %s1794_s22, %s2084_s6 }
  0xc3   : > { %p1382_p6 = scmp.lt.u32.totalorder %s1845_s20, %s1376_s17  ;;  %p1384_p8 = scmp.lt.u32.totalorder %s1376_s17, %s1794_s22 }
  0xc4   : > { %p1378_p3 = pnand %p1377_p2, %p2091_p9 }
  0xc5   : > { %p1383_p7 = por %p1382_p6, %p1381_p5 }
  0xc6   : > { %p1379_p4 = pneg %p1378_p3 }
  0xc7   : > { %p1385_p13 = por %p1384_p8, %p1383_p7 }
  0xc9   : > { %p1386_p0 = pnand %p1385_p13, %p1379_p4 }
  0xcb   : > { %1389 = shalt.err (!%p1386_p0)  }
  0xcc   : > { %1262 = dma.vmem_to_hbm [thread:$0]  (%p2091_p9), %s1778_s10, 128, %s1794_s22, [#allocation4 + $0x4], %s2085_s30, %s2087_s9, %s2089_s12 }
  0xcd   : > { %s1265_s25 = scalar_select %p2094_p10, %s1700_s7, 0 }
  0xce   : > { %s1639_s28 = smov [#allocation3 + $0x8]   ;;  %s1640_s13 = smov [#allocation2 + $0x10]  }
  0xcf   : > { %s775_s26 = sld [smem:[%s1782_s11 + %s1265_s25]]  ;;  %s790_s29 = sshll.u32 %s1639_s28, 4  ;;  %s1872_s29 = int_to_ptr.vmem [resolvable:$true] %s790_s29 }
  0xd0   : > { %s803_s17 = sshll.u32 %s1640_s13, 4  ;;  %s1641_s23 = smov [#allocation3 + $0x10]   ;;  %s1876_s17 = int_to_ptr.vmem [resolvable:$true] %s803_s17 }
  0xd1   : > { %s1269_s18 = scalar_select %p2092_p11, [#allocation6], [#allocation25] }
  0xd2   : > { %s1270_s19 = scalar_select %p2092_p11, %s1712_s14, 0 }
  0xd3   : > { %s1878_s3 = sshll.u32 %s1641_s23, 4  ;;  %s1390_s1 = scalar_lea.vmem %s1865_s15, 128  ;;  %s1937_s3 = int_to_ptr.vmem [resolvable:$true] %s1878_s3 }
  0xd4   : > { %s1874_s22 = sld [smem:[%s1269_s18 + %s1270_s19]]  ;;  %p1391_p1 = scmp.ne.s32.totalorder %s1865_s15, %s1390_s1 }
  0xd5   : > { %s1226_s11 = sshll.u32 %s775_s26, 4  ;;  %p1397_p4 = scmp.lt.s32.totalorder %s1865_s15, %s1776_s8 }
  0xd6   : > { %s778_s30 = scalar_lea.hbm %s2083_s5, %s1226_s11  ;;  %s1886_s12 = scalar_lea.hbm %s2084_s6, %s1226_s11 }
  0xd7   : > { %p1392_p2 = pnand %p1391_p1, %p2094_p10  ;;  %p1398_p5 = scmp.lt.s32.totalorder %s1801_s24, %s1390_s1 }
  0xd9   : > { %p1393_p3 = pneg %p1392_p2  ;;  %p1399_p6 = por %p1398_p5, %p1397_p4 }
  0xdb   : > { %p1400_p7 = pnand %p1399_p6, %p1393_p3 }
  0xdd   : > { %1403 = shalt.err (!%p1400_p7)  }
  0xde   : > { %s1404_s26 = scalar_lea.hbm %s778_s30, 128  ;;  %p1409_p9 = scmp.lt.u32.totalorder %s778_s30, %s2083_s5 }
  0xdf   : > { %p1405_p8 = scmp.ne.s32.totalorder %s778_s30, %s1404_s26  ;;  %p1410_p11 = scmp.lt.u32.totalorder %s1813_s27, %s1404_s26 }
  0xe0   : > { %p1412_p1 = scmp.lt.u32.totalorder %s1404_s26, %s778_s30 }
  0xe1   : > { %p1406_p13 = pnand %p1405_p8, %p2094_p10  ;;  %p1411_p12 = por %p1410_p11, %p1409_p9 }
  0xe3   : > { %p1407_p0 = pneg %p1406_p13  ;;  %p1413_p2 = por %p1412_p1, %p1411_p12 }
  0xe5   : > { %p1414_p4 = pnand %p1413_p2, %p1407_p0 }
  0xe7   : > { %1417 = shalt.err (!%p1414_p4)  }
  0xe8   : > { %s2105_s1 = smov 1   ;;  %s2106_s19 = smov 256  }
  0xe9   : > { %s2107_s11 = smov 16   ;;  %s1418_s23 = scalar_lea.vmem %s1872_s29, 128 }
  0xea   : > { %1266 = dma.vmem_to_hbm [thread:$0]  (%p2094_p10), %s1865_s15, 128, %s778_s30, [#allocation4 + $0x1], %s2107_s11, %s2106_s19, %s2105_s1 }
  0xeb   : > { %p1419_p3 = scmp.ne.s32.totalorder %s1872_s29, %s1418_s23  ;;  %p1425_p12 = scmp.lt.s32.totalorder %s1872_s29, %s1778_s10 }
  0xec   : > { %p1426_p5 = scmp.lt.s32.totalorder %s1833_s16, %s1418_s23 }
  0xed   : > { %p1420_p9 = pnand %p1419_p3, %p2094_p10 }
  0xee   : > { %p1427_p6 = por %p1426_p5, %p1425_p12 }
  0xef   : > { %p1421_p11 = pneg %p1420_p9 }
  0xf1   : > { %p1428_p7 = pnand %p1427_p6, %p1421_p11 }
  0xf3   : > { %1431 = shalt.err (!%p1428_p7)  }
  0xf4   : > { %s1432_s25 = scalar_lea.hbm %s1886_s12, 128  ;;  %p1437_p1 = scmp.lt.u32.totalorder %s1886_s12, %s2084_s6 }
  0xf5   : > { %p1433_p8 = scmp.ne.s32.totalorder %s1886_s12, %s1432_s25  ;;  %p1438_p2 = scmp.lt.u32.totalorder %s1845_s20, %s1432_s25 }
  0xf6   : > { %p1440_p3 = scmp.lt.u32.totalorder %s1432_s25, %s1886_s12 }
  0xf7   : > { %p1434_p13 = pnand %p1433_p8, %p2094_p10  ;;  %p1439_p4 = por %p1438_p2, %p1437_p1 }
  0xf9   : > { %p1435_p0 = pneg %p1434_p13  ;;  %p1441_p9 = por %p1440_p3, %p1439_p4 }
  0xfb   : > { %p1442_p11 = pnand %p1441_p9, %p1435_p0 }
  0xfd   : > { %1445 = shalt.err (!%p1442_p11)  }
  0xfe   : > { %1267 = dma.vmem_to_hbm [thread:$0]  (%p2094_p10), %s1872_s29, 128, %s1886_s12, [#allocation4 + $0x5], %s2107_s11, %s2106_s19, %s2105_s1 }
  0xff   : > { %p2108_p12 = scmp.lt.s32.totalorder %s1724_s21, 8  ;;  %s1229_s13 = sshll.u32 %s1874_s22, 4 }
 0x100   : > { %s800_s18 = scalar_lea.hbm %s2083_s5, %s1229_s13  ;;  %s1945_s15 = scalar_lea.hbm %s2084_s6, %s1229_s13 }
 0x101   : > { %s1933_s28 = scalar_select %p2108_p12, [#allocation6], [#allocation26] }
 0x102   : > { %s1446_s30 = scalar_lea.vmem %s1876_s17, 128  ;;  %p2109_p6 = scmp.lt.s32.totalorder %s1712_s14, 8 }
 0x103   : > { %p1447_p5 = scmp.ne.s32.totalorder %s1876_s17, %s1446_s30  ;;  %p1453_p13 = scmp.lt.s32.totalorder %s1876_s17, %s1776_s8 }
 0x104   : > { %p1454_p0 = scmp.lt.s32.totalorder %s1801_s24, %s1446_s30 }
 0x105   : > { %p1448_p7 = pnand %p1447_p5, %p2109_p6 }
 0x106   : > { %p1455_p1 = por %p1454_p0, %p1453_p13 }
 0x107   : > { %p1449_p8 = pneg %p1448_p7 }
 0x109   : > { %p1456_p2 = pnand %p1455_p1, %p1449_p8 }
 0x10b   : > { %1459 = shalt.err (!%p1456_p2)  }
 0x10c   : > { %s1460_s12 = scalar_lea.hbm %s800_s18, 128  ;;  %p2110_p3 = pmov %p2109_p6 }
 0x10d   : > { %p1461_p4 = scmp.ne.s32.totalorder %s800_s18, %s1460_s12  ;;  %p1465_p12 = scmp.lt.u32.totalorder %s800_s18, %s2083_s5 }
 0x10e   : > { %p1466_p10 = scmp.lt.u32.totalorder %s1813_s27, %s1460_s12  ;;  %p1468_p6 = scmp.lt.u32.totalorder %s1460_s12, %s800_s18 }
 0x10f   : > { %p1462_p9 = pnand %p1461_p4, %p2110_p3 }
 0x110   : > { %p1467_p5 = por %p1466_p10, %p1465_p12 }
 0x111   : > { %p1463_p11 = pneg %p1462_p9 }
 0x112   : > { %p1469_p7 = por %p1468_p6, %p1467_p5 }
 0x114   : > { %p1470_p0 = pnand %p1469_p7, %p1463_p11 }
 0x116   : > { %1473 = shalt.err (!%p1470_p0)  }
 0x117   : > { %p2111_p8 = pmov %p2110_p3  ;;  %s1474_s13 = scalar_lea.vmem %s1937_s3, 128 }
 0x118   : > { %p1475_p13 = scmp.ne.s32.totalorder %s1937_s3, %s1474_s13  ;;  %p2112_p10 = pmov %p2110_p3 }
 0x119   : > { %1271 = dma.vmem_to_hbm [thread:$0]  (%p2111_p8), %s1876_s17, 128, %s800_s18, [#allocation4 + $0x2], %s2107_s11, %s2106_s19, %s2105_s1 }
 0x11a   : > { %p1476_p1 = pnand %p1475_p13, %p2112_p10  ;;  %p1481_p4 = scmp.lt.s32.totalorder %s1937_s3, %s1778_s10 }
 0x11b   : > { %p1482_p3 = scmp.lt.s32.totalorder %s1833_s16, %s1474_s13 }
 0x11c   : > { %p1477_p2 = pneg %p1476_p1 }
 0x11d   : > { %p1483_p9 = por %p1482_p3, %p1481_p4 }
 0x11f   : > { %p1484_p11 = pnand %p1483_p9, %p1477_p2 }
 0x121   : > { %1487 = shalt.err (!%p1484_p11)  }
 0x122   : > { %s1488_s26 = scalar_lea.hbm %s1945_s15, 128  ;;  %p2113_p5 = pmov %p2111_p8 }
 0x123   : > { %p1489_p12 = scmp.ne.s32.totalorder %s1945_s15, %s1488_s26  ;;  %p1493_p0 = scmp.lt.u32.totalorder %s1945_s15, %s2084_s6 }
 0x124   : > { %p1494_p8 = scmp.lt.u32.totalorder %s1845_s20, %s1488_s26  ;;  %p1496_p10 = scmp.lt.u32.totalorder %s1488_s26, %s1945_s15 }
 0x125   : > { %p1490_p6 = pnand %p1489_p12, %p2113_p5 }
 0x126   : > { %p1495_p13 = por %p1494_p8, %p1493_p0 }
 0x127   : > { %p1491_p7 = pneg %p1490_p6 }
 0x128   : > { %p1497_p1 = por %p1496_p10, %p1495_p13 }
 0x12a   : > { %p1498_p2 = pnand %p1497_p1, %p1491_p7 }
 0x12c   : > { %1501 = shalt.err (!%p1498_p2)  }
 0x12d   : > { %p2114_p4 = pmov %p2113_p5  ;;  %p2115_p3 = scmp.lt.s32.totalorder %s1724_s21, 8 }
 0x12e   : > { %s1642_s25 = smov [#allocation2 + $0x18]   ;;  %s1643_s12 = smov [#allocation3 + $0x18]  }
 0x12f   : > { %1272 = dma.vmem_to_hbm [thread:$0]  (%p2114_p4), %s1937_s3, 128, %s1945_s15, [#allocation4 + $0x6], %s2107_s11, %s2106_s19, %s2105_s1 }
 0x130   : > { %s1275_s18 = scalar_select %p2115_p3, %s1724_s21, 0 }
 0x131   : > { %s825_s30 = sshll.u32 %s1642_s25, 4  ;;  %s834_s29 = sshll.u32 %s1643_s12, 4  ;;  %s826_s30 = int_to_ptr.vmem [resolvable:$true] %s825_s30  ;;  %s1994_s29 = int_to_ptr.vmem [resolvable:$true] %s834_s29 }
 0x132   : > { %s819_s23 = sld [smem:[%s1933_s28 + %s1275_s18]]  ;;  %s1502_s15 = scalar_lea.vmem %s826_s30, 128 }
 0x133   : > { %p1503_p9 = scmp.ne.s32.totalorder %s826_s30, %s1502_s15  ;;  %p2116_p11 = pmov %p2115_p3 }
 0x134   : > { %p1509_p6 = scmp.lt.s32.totalorder %s826_s30, %s1776_s8  ;;  %p1510_p7 = scmp.lt.s32.totalorder %s1801_s24, %s1502_s15 }
 0x135   : > { %p1504_p12 = pnand %p1503_p9, %p2116_p11 }
 0x136   : > { %p1511_p0 = por %p1510_p7, %p1509_p6 }
 0x137   : > { %p1505_p5 = pneg %p1504_p12 }
 0x138   : > { %s1232_s22 = sshll.u32 %s819_s23, 4 }
 0x139   : > { %s822_s17 = scalar_lea.hbm %s2083_s5, %s1232_s22  ;;  %s2002_s3 = scalar_lea.hbm %s2084_s6, %s1232_s22 }
 0x13a   : > { %p1512_p8 = pnand %p1511_p0, %p1505_p5 }
 0x13c   : > { %1515 = shalt.err (!%p1512_p8)  }
 0x13d   : > { %s1516_s28 = scalar_lea.hbm %s822_s17, 128  ;;  %p2117_p10 = pmov %p2115_p3 }
 0x13e   : > { %p1517_p13 = scmp.ne.s32.totalorder %s822_s17, %s1516_s28  ;;  %p1521_p4 = scmp.lt.u32.totalorder %s822_s17, %s2083_s5 }
 0x13f   : > { %p1522_p3 = scmp.lt.u32.totalorder %s1813_s27, %s1516_s28  ;;  %p1524_p11 = scmp.lt.u32.totalorder %s1516_s28, %s822_s17 }
 0x140   : > { %p1518_p1 = pnand %p1517_p13, %p2117_p10 }
 0x141   : > { %p1523_p9 = por %p1522_p3, %p1521_p4 }
 0x142   : > { %p1519_p2 = pneg %p1518_p1 }
 0x143   : > { %p1525_p12 = por %p1524_p11, %p1523_p9 }
 0x145   : > { %p1526_p6 = pnand %p1525_p12, %p1519_p2 }
 0x147   : > { %1529 = shalt.err (!%p1526_p6)  }
 0x148   : > { %p2118_p5 = pmov %p2117_p10  ;;  %s1530_s8 = scalar_lea.vmem %s1994_s29, 128 }
 0x149   : > { %p1531_p7 = scmp.ne.s32.totalorder %s1994_s29, %s1530_s8  ;;  %p1537_p10 = scmp.lt.s32.totalorder %s1994_s29, %s1778_s10 }
 0x14a   : > { %1276 = dma.vmem_to_hbm [thread:$0]  (%p2118_p5), %s826_s30, 128, %s822_s17, [#allocation4 + $0x3], %s2107_s11, %s2106_s19, %s2105_s1 }
 0x14b   : > { %p2119_p0 = pmov %p2118_p5  ;;  %p1538_p1 = scmp.lt.s32.totalorder %s1833_s16, %s1530_s8 }
 0x14d   : > { %p1532_p8 = pnand %p1531_p7, %p2119_p0  ;;  %p1539_p2 = por %p1538_p1, %p1537_p10 }
 0x14f   : > { %p1533_p13 = pneg %p1532_p8 }
 0x151   : > { %p1540_p4 = pnand %p1539_p2, %p1533_p13 }
 0x153   : > { %1543 = shalt.err (!%p1540_p4)  }
 0x154   : > { %s1544_s24 = scalar_lea.hbm %s2002_s3, 128  ;;  %p2120_p9 = pmov %p2119_p0 }
 0x155   : > { %p1545_p3 = scmp.ne.s32.totalorder %s2002_s3, %s1544_s24  ;;  %p1549_p6 = scmp.lt.u32.totalorder %s2002_s3, %s2084_s6 }
 0x156   : > { %p1550_p5 = scmp.lt.u32.totalorder %s1845_s20, %s1544_s24  ;;  %p1552_p0 = scmp.lt.u32.totalorder %s1544_s24, %s2002_s3 }
 0x157   : > { %p1546_p11 = pnand %p1545_p3, %p2120_p9 }
 0x158   : > { %p1551_p7 = por %p1550_p5, %p1549_p6 }
 0x159   : > { %p1547_p12 = pneg %p1546_p11 }
 0x15a   : > { %p1553_p8 = por %p1552_p0, %p1551_p7 }
 0x15c   : > { %p1554_p13 = pnand %p1553_p8, %p1547_p12 }
 0x15e   : > { %1557 = shalt.err (!%p1554_p13)  }
 0x15f   : > { %p2121_p10 = pmov %p2120_p9  ;;  %p2122_p1 = scmp.lt.s32.totalorder %s1688_s0, 8 }
 0x161   : > { %1277 = dma.vmem_to_hbm [thread:$0]  (%p2121_p10), %s1994_s29, 128, %s2002_s3, [#allocation4 + $0x7], %s2107_s11, %s2106_s19, %s2105_s1 }
 0x162   : > { %1597 = dma.done.wait (%p2122_p1), [#allocation4], 128  ;;  %p2123_p2 = pmov %p2122_p1 }
 0x163   : > { %p2124_p4 = pmov %p2122_p1 }
 0x164   : > { %1599 = vsyncadd (%p2123_p2), [#allocation4], 4294967168 }
 0x165   : > { %1601 = dma.done.wait (%p2124_p4), [#allocation4 + $0x4], 128  ;;  %p2125_p3 = pmov %p2122_p1 }
 0x166   : > { %p2126_p9 = scmp.lt.s32.totalorder %s1700_s7, 8 }
 0x167   : > { %1603 = vsyncadd (%p2125_p3), [#allocation4 + $0x4], 4294967168 }
 0x168   : > { %1605 = dma.done.wait (%p2126_p9), [#allocation4 + $0x1], 128  ;;  %p2127_p11 = pmov %p2126_p9 }
 0x169   : > { %p2128_p12 = pmov %p2126_p9 }
 0x16a   : > { %1607 = vsyncadd (%p2127_p11), [#allocation4 + $0x1], 4294967168 }
 0x16b   : > { %1609 = dma.done.wait (%p2128_p12), [#allocation4 + $0x5], 128  ;;  %p2129_p6 = pmov %p2126_p9 }
 0x16c   : > { %p2130_p5 = scmp.lt.s32.totalorder %s1712_s14, 8 }
 0x16d   : > { %1611 = vsyncadd (%p2129_p6), [#allocation4 + $0x5], 4294967168 }
 0x16e   : > { %1613 = dma.done.wait (%p2130_p5), [#allocation4 + $0x2], 128  ;;  %p2131_p7 = pmov %p2130_p5 }
 0x16f   : > { %p2132_p0 = pmov %p2130_p5 }
 0x170   : > { %1615 = vsyncadd (%p2131_p7), [#allocation4 + $0x2], 4294967168 }
 0x171   : > { %1617 = dma.done.wait (%p2132_p0), [#allocation4 + $0x6], 128  ;;  %p2133_p8 = pmov %p2132_p0 }
 0x172   : > { %p2134_p13 = pmov %p2121_p10 }
 0x173   : > { %1619 = vsyncadd (%p2133_p8), [#allocation4 + $0x6], 4294967168 }
 0x174   : > { %1621 = dma.done.wait (%p2134_p13), [#allocation4 + $0x3], 128 }
 0x175   : > { %1623 = vsyncadd (%p2121_p10), [#allocation4 + $0x3], 4294967168  ;;  %p2135_p1 = pmov %p2121_p10 }
 0x177   : > { %1625 = dma.done.wait (%p2135_p1), [#allocation4 + $0x7], 128  ;;  %p2136_p2 = pmov %p2135_p1 }
 0x178   : > { %s23_s4 = sadd.s32 1, %s1630_s4  }
 0x179   : > { %1627 = vsyncadd (%p2136_p2), [#allocation4 + $0x7], 4294967168  ;;  %p20_p4 = scmp.ge.s32.totalorder %s23_s4, 2  }
 0x17b   :  { %22 = sbr.rel (!%p20_p4) target bundleno = 17 (0x11), region = 554 }
 0x182   :  { %889 = vsyncmov [#allocation4] }
 0x185   :  { %s890_s0 = vpop.sfrf %889 }
 0x186   :  { %p1238_p3 = scmp.ne.s32.totalorder %s890_s0, 0 }
 0x188   :  { %894 = shalt.err (%p1238_p3)  }
 0x189   :  { %896 = vsyncmov [#allocation4 + $0x1] }
 0x18c   :  { %s897_s7 = vpop.sfrf %896 }
 0x18d   :  { %p1239_p9 = scmp.ne.s32.totalorder %s897_s7, 0 }
 0x18f   :  { %901 = shalt.err (%p1239_p9)  }
 0x190   :  { %903 = vsyncmov [#allocation4 + $0x2] }
 0x193   :  { %s904_s14 = vpop.sfrf %903 }
 0x194   :  { %p1240_p11 = scmp.ne.s32.totalorder %s904_s14, 0 }
 0x196   :  { %908 = shalt.err (%p1240_p11)  }
 0x197   :  { %910 = vsyncmov [#allocation4 + $0x3] }
 0x19a   :  { %s911_s21 = vpop.sfrf %910 }
 0x19b   :  { %p1241_p12 = scmp.ne.s32.totalorder %s911_s21, 0 }
 0x19d   :  { %915 = shalt.err (%p1241_p12)  }
 0x19e   :  { %917 = vsyncmov [#allocation4 + $0x4] }
 0x1a1   :  { %s918_s10 = vpop.sfrf %917 }
 0x1a2   :  { %p1242_p6 = scmp.ne.s32.totalorder %s918_s10, 0 }
 0x1a4   :  { %922 = shalt.err (%p1242_p6)  }
 0x1a5   :  { %924 = vsyncmov [#allocation4 + $0x5] }
 0x1a8   :  { %s925_s5 = vpop.sfrf %924 }
 0x1a9   :  { %p1243_p5 = scmp.ne.s32.totalorder %s925_s5, 0 }
 0x1ab   :  { %929 = shalt.err (%p1243_p5)  }
 0x1ac   :  { %931 = vsyncmov [#allocation4 + $0x6] }
 0x1af   :  { %s932_s6 = vpop.sfrf %931 }
 0x1b0   :  { %p1244_p7 = scmp.ne.s32.totalorder %s932_s6, 0 }
 0x1b2   :  { %936 = shalt.err (%p1244_p7)  }
 0x1b3   :  { %938 = vsyncmov [#allocation4 + $0x7] }
 0x1b6   :  { %s939_s4 = vpop.sfrf %938 }
 0x1b7   :  { %p1245_p0 = scmp.ne.s32.totalorder %s939_s4, 0 }
 0x1b9   :  { %943 = shalt.err (%p1245_p0)  }

</bundles_post_ra>
